<compile_context>
chip_gen: v5e
topology: v5e:2x2
jax: 0.10.0
libtpu: 0.0.40
codegen_flags: <defaults>
</compile_context>

<pallas_src>
import jax
import jax.numpy as jnp
from jax.experimental import pallas as pl
from jax.experimental.pallas import tpu as pltpu

# ----------------------------- config (small, deterministic) -----------------------
VOCAB = 11
MAX_ROWS = 4
MAX_COLS = 4
EMB_DIM = 32
LATENT_DIM = 32
NUM_LAYERS = 1
NUM_HEADS = 4
HEAD_DIM = EMB_DIM // NUM_HEADS
MLP_FACTOR = 2
MLP_HIDDEN = MLP_FACTOR * EMB_DIM
ACTIVATION = "silu"                      # config.transformer_layer.activation
LN_EPS = 1e-5
NEG = -1e30                              # additive mask value (stand-in for -inf)

T_LOGICAL = 1 + 4 + 2 * MAX_ROWS * MAX_COLS          # 37 real tokens
T_PAD = ((T_LOGICAL + 7) // 8) * 8                    # 40: sublane aligned

EMBED_KEYS = ("pos_row_embed", "pos_col_embed", "colors_embed", "channels_embed",
              "grid_shapes_row_embed", "grid_shapes_col_embed", "cls_token")

# dropout rates are 0.0 in this synthetic config -> all dropouts are identity.
# TODO(synk): stateful dropout RNG not implemented (rate=0 / eval mode is identity anyway).


def _layernorm(x):
    mu = jnp.mean(x, axis=-1, keepdims=True)
    var = jnp.mean((x - mu) ** 2, axis=-1, keepdims=True)
    return (x - mu) * jax.lax.rsqrt(var + LN_EPS)


def _act(x):
    if ACTIVATION == "relu":
        return jnp.maximum(x, 0.0)
    return x / (1.0 + jnp.exp(-x))       # silu = x * sigmoid(x)


# ----------------------------- fused Pallas kernel ----------------------------------
def make_encoder_kernel(bpg):
    """Kernel processing `bpg` batch elements per grid step, all layers + head fused."""

    def encoder_kernel(x_ref, mask_ref, wqkv_ref, bqkv_ref, wo_ref, bo_ref,
                       w1_ref, b1_ref, w2_ref, b2_ref, wmu_ref, out_ref):
        # x_ref:    (bpg, T_PAD, D)
        # mask_ref: (bpg, 1, T_PAD)   additive attention mask over keys
        # wqkv_ref: (L, D, 3D)  (q columns pre-scaled by 1/sqrt(HEAD_DIM))
        # bqkv_ref: (L, 1, 3D)
        # wo_ref:   (L, D, D)    bo_ref: (L, 1, D)
        # w1_ref:   (L, D, MLP_HIDDEN)   b1_ref: (L, 1, MLP_HIDDEN)
        # w2_ref:   (L, MLP_HIDDEN, D)   b2_ref: (L, 1, D)
        # wmu_ref:  (D, LATENT_DIM)
        # out_ref:  (bpg, 1, LATENT_DIM)
        if bpg == 1:
            x = x_ref[0]                                        # (T, D), stays in VMEM
        else:
            # collapse leading batch dim into sublanes (layout-identical reshape)
            x = x_ref[...].reshape(bpg * T_PAD, EMB_DIM)
        masks = [mask_ref[b] for b in range(bpg)]               # each (1, T_PAD)

        # NOTE: at NUM_LAYERS == 1 a static Python unroll is fine; switch to a
        # lax.fori_loop with dynamic wqkv_ref[l] indexing if NUM_LAYERS grows.
        for l in range(NUM_LAYERS):
            wqkv = wqkv_ref[l]                                  # (D, 3D)
            bqkv = bqkv_ref[l]                                  # (1, 3D)
            wo = wo_ref[l]                                      # (D, D)
            bo = bo_ref[l]                                      # (1, D)
            w1 = w1_ref[l]
            b1 = b1_ref[l]
            w2 = w2_ref[l]
            b2 = b2_ref[l]

            # ---- self-attention block (pre-LN) ----
            xn = _layernorm(x)                                  # (bpg*T, D) f32
            # one fused lane-dense QKV matmul (scale already folded into q columns)
            qkv = jnp.dot(xn, wqkv, preferred_element_type=jnp.float32) + bqkv

            o_rows = []
            for b in range(bpg):                                # static unroll over batch
                qkv_b = qkv[b * T_PAD:(b + 1) * T_PAD]          # (T, 3D)
                add_mask = masks[b]                             # (1, T)
                head_outs = []
                for h in range(NUM_HEADS):                      # static unroll over heads
                    lo = h * HEAD_DIM
                    qh = qkv_b[:, lo:lo + HEAD_DIM]                               # (T, hd)
                    kh = qkv_b[:, EMB_DIM + lo:EMB_DIM + lo + HEAD_DIM]           # (T, hd)
                    vh = qkv_b[:, 2 * EMB_DIM + lo:2 * EMB_DIM + lo + HEAD_DIM]   # (T, hd)
                    # s = q @ k^T  (contraction over head dim, no explicit transpose)
                    s = jax.lax.dot_general(qh, kh, (((1,), (1,)), ((), ())),
                                            preferred_element_type=jnp.float32)   # (T, T)
                    s = s + add_mask                            # mask over keys
                    s = s - jnp.max(s, axis=-1, keepdims=True)
                    p = jnp.exp(s)
                    p = p * pl.reciprocal(jnp.sum(p, axis=-1, keepdims=True),
                                          approx=True)          # EUP slot, frees VALU
                    head_outs.append(jnp.dot(p, vh, preferred_element_type=jnp.float32))
                o_rows.append(jnp.concatenate(head_outs, axis=-1))                # (T, D)
            o = o_rows[0] if bpg == 1 else jnp.concatenate(o_rows, axis=0)        # (bpg*T, D)

            # single K=32 output projection (replaces 4 K=8 matmuls + cross-head sum)
            attn = jnp.dot(o, wo, preferred_element_type=jnp.float32) + bo
            x = x + attn                                        # residual

            # ---- MLP block (pre-LN) ----
            xn2 = _layernorm(x)
            h1 = _act(jnp.dot(xn2, w1, preferred_element_type=jnp.float32) + b1)
            x = x + jnp.dot(h1, w2, preferred_element_type=jnp.float32) + b2

        # ---- fused final CLS LayerNorm + latent_mu projection (no bias) ----
        wmu = wmu_ref[...]
        for b in range(bpg):
            cls = _layernorm(x[b * T_PAD:b * T_PAD + 1, :])     # (1, D)
            out_ref[b] = jnp.dot(cls, wmu, preferred_element_type=jnp.float32)

    return encoder_kernel


# ----------------------------- host-side weight preparation (once, outside jit) -----
def prepare_weights(params):
    """Stack per-layer weights over L and fold 1/sqrt(HEAD_DIM) into the Q columns."""
    scale = 1.0 / (HEAD_DIM ** 0.5)
    col_scale = jnp.concatenate([
        jnp.full((EMB_DIM,), scale, dtype=jnp.float32),
        jnp.ones((2 * EMB_DIM,), dtype=jnp.float32)])           # [q | k | v] columns
    layers = params["layers"]
    return dict(
        wqkv=jnp.stack([lw["wqkv"] * col_scale[None, :] for lw in layers]),   # (L, D, 3D)
        bqkv=jnp.stack([lw["bqkv"] * col_scale[None, :] for lw in layers]),   # (L, 1, 3D)
        wo=jnp.stack([lw["wo"] for lw in layers]),                            # (L, D, D)
        bo=jnp.stack([lw["bo"] for lw in layers]),                            # (L, 1, D)
        w1=jnp.stack([lw["w1"] for lw in layers]),                            # (L, D, H)
        b1=jnp.stack([lw["b1"] for lw in layers]),                            # (L, 1, H)
        w2=jnp.stack([lw["w2"] for lw in layers]),                            # (L, H, D)
        b2=jnp.stack([lw["b2"] for lw in layers]),                            # (L, 1, D)
        wmu=params["latent_mu_w"],                                            # (D, LATENT)
    )


# ----------------------------- JAX glue (embeddings / masks) ------------------------
def embed_grids(params, pairs, grid_shapes):
    B, R, C, _ = pairs.shape
    colors = params["colors_embed"][pairs]                                   # (B,R,C,2,D)
    row_embed = params["pos_row_embed"][:R]                                  # (R,D)
    col_embed = params["pos_col_embed"][:C]                                  # (C,D)
    pos = row_embed[:, None, None, :] + col_embed[None, :, None, :]          # (R,C,1,D)
    chan = params["channels_embed"]                                          # (2,D)
    x = colors + pos[None] + chan[None, None, None]                          # (B,R,C,2,D)
    x = x.reshape(B, R * C * 2, EMB_DIM)

    gs = grid_shapes.astype(jnp.int32)
    row_part = params["grid_shapes_row_embed"][gs[:, 0, :] - 1] + chan[None]  # (B,2,D)
    col_part = params["grid_shapes_col_embed"][gs[:, 1, :] - 1] + chan[None]  # (B,2,D)
    shapes_embed = jnp.concatenate([row_part, col_part], axis=1)              # (B,4,D)

    cls = jnp.broadcast_to(params["cls_token"][0][None, None, :], (B, 1, EMB_DIM))
    return jnp.concatenate([cls, shapes_embed, x], axis=1)                    # (B, 37, D)


def _used_tokens(grid_shapes):
    rows_used = jnp.max(grid_shapes[:, 0, :], axis=-1)
    cols_used = jnp.max(grid_shapes[:, 1, :], axis=-1)
    return 1 + 4 + 2 * rows_used * cols_used                                  # (B,)


def make_pad_mask(grid_shapes):
    """True = padding token over the logical T=37 (matches PyTorch make_pad_mask)."""
    used = _used_tokens(grid_shapes)
    return jnp.arange(T_LOGICAL)[None, :] >= used[:, None]


def make_add_mask_padded(grid_shapes):
    """Additive key mask over T_PAD keys, reproducing the PyTorch semantics.

    The reference TransformerLayer does key_padding_mask = ~pad_mask (True = ignore),
    so the VALID tokens are ignored as keys and only padding tokens are attended.
    The 3 extra alignment tokens (t >= 37) do not exist in the original model, so they
    are always masked out (NEG), regardless of the inverted-mask convention.
    """
    used = _used_tokens(grid_shapes)                                          # (B,)
    tok = jnp.arange(T_PAD)[None, :]                                          # (1, T_PAD)
    attended = (tok >= used[:, None]) & (tok < T_LOGICAL)                     # orig pad toks
    return jnp.where(attended, 0.0, NEG).astype(jnp.float32)[:, None, :]      # (B,1,T_PAD)


@jax.jit
def encoder_forward(embed_params, weights, pairs, grid_shapes):
    x = embed_grids(embed_params, pairs, grid_shapes)                         # (B, 37, D)
    B = x.shape[0]
    # pad token dim to a sublane multiple; padded rows are zero and masked as keys
    x = jnp.pad(x, ((0, 0), (0, T_PAD - T_LOGICAL), (0, 0)))                  # (B, 40, D)
    add_mask = make_add_mask_padded(grid_shapes)                              # (B, 1, 40)

    # One grid step per TensorCore: a size-2 "parallel" axis keeps both v7x cores
    # busy; on v5e/v6e the single extra serial step costs ~0.35 us (negligible).
    grid_dim = 2 if (B >= 2 and B % 2 == 0) else 1
    bpg = B // grid_dim

    def full_spec(arr):
        nd = arr.ndim
        # constant index_map: weights are VMEM-resident; re-DMA across the (<=2)
        # grid steps is negligible at these KB-sized weights.
        return pl.BlockSpec(arr.shape, lambda g, _nd=nd: (0,) * _nd)

    out3 = pl.pallas_call(
        make_encoder_kernel(bpg),
        out_shape=jax.ShapeDtypeStruct((B, 1, LATENT_DIM), jnp.float32),
        grid=(grid_dim,),
        in_specs=[
            pl.BlockSpec((bpg, T_PAD, EMB_DIM), lambda g: (g, 0, 0)),
            pl.BlockSpec((bpg, 1, T_PAD), lambda g: (g, 0, 0)),
            full_spec(weights["wqkv"]),
            full_spec(weights["bqkv"]),
            full_spec(weights["wo"]),
            full_spec(weights["bo"]),
            full_spec(weights["w1"]),
            full_spec(weights["b1"]),
            full_spec(weights["w2"]),
            full_spec(weights["b2"]),
            full_spec(weights["wmu"]),
        ],
        out_specs=pl.BlockSpec((bpg, 1, LATENT_DIM), lambda g: (g, 0, 0)),
        # Total VMEM use here is well under 1 MiB, so default scoped limits are fine
        # on all generations; set vmem_limit_bytes if EMB_DIM / NUM_LAYERS grow.
        compiler_params=pltpu.CompilerParams(dimension_semantics=("parallel",)),
    )(x, add_mask, weights["wqkv"], weights["bqkv"], weights["wo"], weights["bo"],
      weights["w1"], weights["b1"], weights["w2"], weights["b2"], weights["wmu"])

    return out3[:, 0, :]                                                      # (B, LATENT)


# ----------------------------- pure-JAX reference (for self-check) ------------------
def ref_forward(params, pairs, grid_shapes):
    x = embed_grids(params, pairs, grid_shapes)
    pad = make_pad_mask(grid_shapes)
    add_mask = jnp.where(pad, 0.0, NEG).astype(jnp.float32)
    B, T, D = x.shape
    for lw in params["layers"]:
        xn = _layernorm(x)
        qkv = xn @ lw["wqkv"] + lw["bqkv"][0]
        q, k, v = jnp.split(qkv, 3, axis=-1)
        q = q.reshape(B, T, NUM_HEADS, HEAD_DIM)
        k = k.reshape(B, T, NUM_HEADS, HEAD_DIM)
        v = v.reshape(B, T, NUM_HEADS, HEAD_DIM)
        s = jnp.einsum("bqhd,bkhd->bhqk", q, k) / (HEAD_DIM ** 0.5)
        s = s + add_mask[:, None, None, :]
        p = jax.nn.softmax(s, axis=-1)
        o = jnp.einsum("bhqk,bkhd->bqhd", p, v).reshape(B, T, D)
        x = x + (o @ lw["wo"] + lw["bo"][0])
        xn2 = _layernorm(x)
        h = _act(xn2 @ lw["w1"] + lw["b1"][0])
        x = x + (h @ lw["w2"] + lw["b2"][0])
    cls = _layernorm(x[:, 0, :])
    return cls @ params["latent_mu_w"]


# ----------------------------- deterministic parameter init -------------------------
def init_params(key):
    ks = jax.random.split(key, 9)

    def nrm(k, shape, std=0.05):
        return std * jax.random.normal(k, shape, dtype=jnp.float32)

    params = {
        "pos_row_embed": nrm(ks[0], (MAX_ROWS, EMB_DIM)),
        "pos_col_embed": nrm(ks[1], (MAX_COLS, EMB_DIM)),
        "colors_embed": nrm(ks[2], (VOCAB, EMB_DIM)),
        "channels_embed": nrm(ks[3], (2, EMB_DIM)),
        "grid_shapes_row_embed": nrm(ks[4], (MAX_ROWS, EMB_DIM)),
        "grid_shapes_col_embed": nrm(ks[5], (MAX_COLS, EMB_DIM)),
        "cls_token": nrm(ks[6], (1, EMB_DIM)),
        "latent_mu_w": nrm(ks[7], (EMB_DIM, LATENT_DIM)),   # (in, out), no bias
        "layers": [],
    }
    lkeys = jax.random.split(ks[8], NUM_LAYERS)
    for i in range(NUM_LAYERS):
        kk = jax.random.split(lkeys[i], 8)
        params["layers"].append({
            "wqkv": nrm(kk[0], (EMB_DIM, 3 * EMB_DIM)),
            "bqkv": nrm(kk[1], (1, 3 * EMB_DIM)),
            "wo":   nrm(kk[2], (EMB_DIM, EMB_DIM)),
            "bo":   nrm(kk[3], (1, EMB_DIM)),
            "w1":   nrm(kk[4], (EMB_DIM, MLP_HIDDEN)),
            "b1":   nrm(kk[5], (1, MLP_HIDDEN)),
            "w2":   nrm(kk[6], (MLP_HIDDEN, EMB_DIM)),
            "b2":   nrm(kk[7], (1, EMB_DIM)),
        })
    return params


# ----------------------------- main --------------------------------------------------
if __name__ == "__main__":
    key = jax.random.PRNGKey(0)
    kp, k1, k2 = jax.random.split(key, 3)
    params = init_params(kp)

    B = 2
    # pairs: (B, R, C, 2) token ids; grid_shapes: (B, 2, 2) with values in [1, MAX-1]
    # so that padding tokens always exist (avoids the fully-masked-row corner case
    # where the PyTorch model itself would produce NaN).
    pairs = jax.random.randint(k1, (B, MAX_ROWS, MAX_COLS, 2), 0, VOCAB, dtype=jnp.int32)
    grid_shapes = jax.random.randint(k2, (B, 2, 2), 1, MAX_ROWS, dtype=jnp.int32)

    embed_params = {k: params[k] for k in EMBED_KEYS}
    weights = prepare_weights(params)        # once, on host, OUTSIDE the jit

    out = encoder_forward(embed_params, weights, pairs, grid_shapes)
    out = jax.block_until_ready(out)

    ref = ref_forward(params, pairs, grid_shapes)
    assert out.shape == (B, LATENT_DIM), out.shape
    max_err = float(jnp.max(jnp.abs(out - ref)))
    assert max_err < 1e-2, f"mismatch vs reference: {max_err}"

    print("KERNEL_OK")
</pallas_src>

<mosaic_0001>
module attributes {stable_mosaic.version = 11 : i64} {
  func.func @encoder_kernel(%arg0: i32, %arg1: memref<1x40x32xf32, #tpu.memory_space<vmem>>, %arg2: memref<1x1x40xf32, #tpu.memory_space<vmem>>, %arg3: memref<1x32x96xf32, #tpu.memory_space<vmem>>, %arg4: memref<1x1x96xf32, #tpu.memory_space<vmem>>, %arg5: memref<1x32x32xf32, #tpu.memory_space<vmem>>, %arg6: memref<1x1x32xf32, #tpu.memory_space<vmem>>, %arg7: memref<1x32x64xf32, #tpu.memory_space<vmem>>, %arg8: memref<1x1x64xf32, #tpu.memory_space<vmem>>, %arg9: memref<1x64x32xf32, #tpu.memory_space<vmem>>, %arg10: memref<1x1x32xf32, #tpu.memory_space<vmem>>, %arg11: memref<32x32xf32, #tpu.memory_space<vmem>>, %arg12: memref<1x1x32xf32, #tpu.memory_space<vmem>>) attributes {dimension_semantics = [#tpu.dimension_semantics<parallel>], iteration_bounds = array<i64: 2>, scalar_prefetch = 0 : i64, scratch_operands = 0 : i64, tpu.core_type = #tpu.core_type<tc>, window_params = [{transform_indices = @transform_0, window_bounds = array<i64: 1, 40, 32>}, {transform_indices = @transform_1, window_bounds = array<i64: 1, 1, 40>}, {pipeline_mode = #tpu.pipeline_mode<synchronous>, transform_indices = @transform_2, window_bounds = array<i64: 1, 32, 96>}, {pipeline_mode = #tpu.pipeline_mode<synchronous>, transform_indices = @transform_3, window_bounds = array<i64: 1, 1, 96>}, {pipeline_mode = #tpu.pipeline_mode<synchronous>, transform_indices = @transform_4, window_bounds = array<i64: 1, 32, 32>}, {pipeline_mode = #tpu.pipeline_mode<synchronous>, transform_indices = @transform_5, window_bounds = array<i64: 1, 1, 32>}, {pipeline_mode = #tpu.pipeline_mode<synchronous>, transform_indices = @transform_6, window_bounds = array<i64: 1, 32, 64>}, {pipeline_mode = #tpu.pipeline_mode<synchronous>, transform_indices = @transform_7, window_bounds = array<i64: 1, 1, 64>}, {pipeline_mode = #tpu.pipeline_mode<synchronous>, transform_indices = @transform_8, window_bounds = array<i64: 1, 64, 32>}, {pipeline_mode = #tpu.pipeline_mode<synchronous>, transform_indices = @transform_9, window_bounds = array<i64: 1, 1, 32>}, {pipeline_mode = #tpu.pipeline_mode<synchronous>, transform_indices = @transform_10, window_bounds = array<i64: 32, 32>}, {transform_indices = @transform_11, window_bounds = array<i64: 1, 1, 32>}]} {
    %c0 = arith.constant 0 : index
    %c0_0 = arith.constant 0 : index
    %c0_1 = arith.constant 0 : index
    %0 = vector.load %arg1[%c0, %c0_0, %c0_1] : memref<1x40x32xf32, #tpu.memory_space<vmem>>, vector<1x40x32xf32>
    %1 = vector.shape_cast %0 : vector<1x40x32xf32> to vector<40x32xf32>
    %c0_2 = arith.constant 0 : index
    %c0_3 = arith.constant 0 : index
    %c0_4 = arith.constant 0 : index
    %2 = vector.load %arg2[%c0_2, %c0_3, %c0_4] : memref<1x1x40xf32, #tpu.memory_space<vmem>>, vector<1x1x40xf32>
    %3 = vector.shape_cast %2 : vector<1x1x40xf32> to vector<1x40xf32>
    %c0_5 = arith.constant 0 : index
    %c0_6 = arith.constant 0 : index
    %c0_7 = arith.constant 0 : index
    %4 = vector.load %arg3[%c0_5, %c0_6, %c0_7] : memref<1x32x96xf32, #tpu.memory_space<vmem>>, vector<1x32x96xf32>
    %5 = vector.shape_cast %4 : vector<1x32x96xf32> to vector<32x96xf32>
    %c0_8 = arith.constant 0 : index
    %c0_9 = arith.constant 0 : index
    %c0_10 = arith.constant 0 : index
    %6 = vector.load %arg4[%c0_8, %c0_9, %c0_10] : memref<1x1x96xf32, #tpu.memory_space<vmem>>, vector<1x1x96xf32>
    %7 = vector.shape_cast %6 : vector<1x1x96xf32> to vector<1x96xf32>
    %c0_11 = arith.constant 0 : index
    %c0_12 = arith.constant 0 : index
    %c0_13 = arith.constant 0 : index
    %8 = vector.load %arg5[%c0_11, %c0_12, %c0_13] : memref<1x32x32xf32, #tpu.memory_space<vmem>>, vector<1x32x32xf32>
    %9 = vector.shape_cast %8 : vector<1x32x32xf32> to vector<32x32xf32>
    %c0_14 = arith.constant 0 : index
    %c0_15 = arith.constant 0 : index
    %c0_16 = arith.constant 0 : index
    %10 = vector.load %arg6[%c0_14, %c0_15, %c0_16] : memref<1x1x32xf32, #tpu.memory_space<vmem>>, vector<1x1x32xf32>
    %11 = vector.shape_cast %10 : vector<1x1x32xf32> to vector<1x32xf32>
    %c0_17 = arith.constant 0 : index
    %c0_18 = arith.constant 0 : index
    %c0_19 = arith.constant 0 : index
    %12 = vector.load %arg7[%c0_17, %c0_18, %c0_19] : memref<1x32x64xf32, #tpu.memory_space<vmem>>, vector<1x32x64xf32>
    %13 = vector.shape_cast %12 : vector<1x32x64xf32> to vector<32x64xf32>
    %c0_20 = arith.constant 0 : index
    %c0_21 = arith.constant 0 : index
    %c0_22 = arith.constant 0 : index
    %14 = vector.load %arg8[%c0_20, %c0_21, %c0_22] : memref<1x1x64xf32, #tpu.memory_space<vmem>>, vector<1x1x64xf32>
    %15 = vector.shape_cast %14 : vector<1x1x64xf32> to vector<1x64xf32>
    %c0_23 = arith.constant 0 : index
    %c0_24 = arith.constant 0 : index
    %c0_25 = arith.constant 0 : index
    %16 = vector.load %arg9[%c0_23, %c0_24, %c0_25] : memref<1x64x32xf32, #tpu.memory_space<vmem>>, vector<1x64x32xf32>
    %17 = vector.shape_cast %16 : vector<1x64x32xf32> to vector<64x32xf32>
    %c0_26 = arith.constant 0 : index
    %c0_27 = arith.constant 0 : index
    %c0_28 = arith.constant 0 : index
    %18 = vector.load %arg10[%c0_26, %c0_27, %c0_28] : memref<1x1x32xf32, #tpu.memory_space<vmem>>, vector<1x1x32xf32>
    %19 = vector.shape_cast %18 : vector<1x1x32xf32> to vector<1x32xf32>
    %cst = arith.constant dense<0.000000e+00> : vector<40xf32>
    %20 = vector.multi_reduction <add>, %1, %cst [1] : vector<40x32xf32> to vector<40xf32>
    %21 = vector.shape_cast %20 : vector<40xf32> to vector<40x1xf32>
    %cst_29 = arith.constant 3.200000e+01 : f32
    %22 = vector.broadcast %cst_29 : f32 to vector<40x1xf32>
    %23 = arith.divf %21, %22 : vector<40x1xf32>
    %24 = vector.broadcast %23 : vector<40x1xf32> to vector<40x32xf32>
    %25 = arith.subf %1, %24 : vector<40x32xf32>
    %26 = arith.mulf %25, %25 : vector<40x32xf32>
    %cst_30 = arith.constant dense<0.000000e+00> : vector<40xf32>
    %27 = vector.multi_reduction <add>, %26, %cst_30 [1] : vector<40x32xf32> to vector<40xf32>
    %28 = vector.shape_cast %27 : vector<40xf32> to vector<40x1xf32>
    %cst_31 = arith.constant 3.200000e+01 : f32
    %29 = vector.broadcast %cst_31 : f32 to vector<40x1xf32>
    %30 = arith.divf %28, %29 : vector<40x1xf32>
    %31 = vector.broadcast %23 : vector<40x1xf32> to vector<40x32xf32>
    %32 = arith.subf %1, %31 : vector<40x32xf32>
    %cst_32 = arith.constant 9.99999974E-6 : f32
    %33 = vector.broadcast %cst_32 : f32 to vector<40x1xf32>
    %34 = arith.addf %30, %33 : vector<40x1xf32>
    %35 = math.rsqrt %34 : vector<40x1xf32>
    %36 = vector.broadcast %35 : vector<40x1xf32> to vector<40x32xf32>
    %37 = arith.mulf %32, %36 : vector<40x32xf32>
    %cst_33 = arith.constant dense<0.000000e+00> : vector<40x96xf32>
    %38 = tpu.matmul %37, %5, %cst_33 {dimension_numbers = #tpu.dot_dimension_numbers<[1], [0], [0], [1], [0, 0, 1, 1], [], []>} : vector<40x32xf32>, vector<32x96xf32>, vector<40x96xf32> -> vector<40x96xf32>
    %39 = vector.broadcast %7 : vector<1x96xf32> to vector<40x96xf32>
    %40 = arith.addf %38, %39 : vector<40x96xf32>
    %41 = vector.extract_strided_slice %40 {offsets = [0, 0], sizes = [40, 8], strides = [1, 1]} : vector<40x96xf32> to vector<40x8xf32>
    %42 = vector.extract_strided_slice %40 {offsets = [0, 32], sizes = [40, 8], strides = [1, 1]} : vector<40x96xf32> to vector<40x8xf32>
    %43 = vector.extract_strided_slice %40 {offsets = [0, 64], sizes = [40, 8], strides = [1, 1]} : vector<40x96xf32> to vector<40x8xf32>
    %cst_34 = arith.constant dense<0.000000e+00> : vector<40x40xf32>
    %44 = tpu.matmul %41, %42, %cst_34 {dimension_numbers = #tpu.dot_dimension_numbers<[1], [1], [0], [0], [0, 0, 1, 0], [], []>} : vector<40x8xf32>, vector<40x8xf32>, vector<40x40xf32> -> vector<40x40xf32>
    %45 = vector.broadcast %3 : vector<1x40xf32> to vector<40x40xf32>
    %46 = arith.addf %44, %45 : vector<40x40xf32>
    %cst_35 = arith.constant dense<0xFF800000> : vector<40xf32>
    %47 = vector.multi_reduction <maximumf>, %46, %cst_35 [1] : vector<40x40xf32> to vector<40xf32>
    %48 = vector.shape_cast %47 : vector<40xf32> to vector<40x1xf32>
    %49 = vector.broadcast %48 : vector<40x1xf32> to vector<40x40xf32>
    %50 = arith.subf %46, %49 : vector<40x40xf32>
    %51 = math.exp %50 : vector<40x40xf32>
    %cst_36 = arith.constant dense<0.000000e+00> : vector<40xf32>
    %52 = vector.multi_reduction <add>, %51, %cst_36 [1] : vector<40x40xf32> to vector<40xf32>
    %53 = vector.shape_cast %52 : vector<40xf32> to vector<40x1xf32>
    %54 = tpu.reciprocal %53 {approx = true} : vector<40x1xf32> -> vector<40x1xf32>
    %55 = vector.broadcast %54 : vector<40x1xf32> to vector<40x40xf32>
    %56 = arith.mulf %51, %55 : vector<40x40xf32>
    %cst_37 = arith.constant dense<0.000000e+00> : vector<40x8xf32>
    %57 = tpu.matmul %56, %43, %cst_37 {dimension_numbers = #tpu.dot_dimension_numbers<[1], [0], [0], [1], [0, 0, 1, 1], [], []>} : vector<40x40xf32>, vector<40x8xf32>, vector<40x8xf32> -> vector<40x8xf32>
    %58 = vector.extract_strided_slice %40 {offsets = [0, 8], sizes = [40, 8], strides = [1, 1]} : vector<40x96xf32> to vector<40x8xf32>
    %59 = vector.extract_strided_slice %40 {offsets = [0, 40], sizes = [40, 8], strides = [1, 1]} : vector<40x96xf32> to vector<40x8xf32>
    %60 = vector.extract_strided_slice %40 {offsets = [0, 72], sizes = [40, 8], strides = [1, 1]} : vector<40x96xf32> to vector<40x8xf32>
    %cst_38 = arith.constant dense<0.000000e+00> : vector<40x40xf32>
    %61 = tpu.matmul %58, %59, %cst_38 {dimension_numbers = #tpu.dot_dimension_numbers<[1], [1], [0], [0], [0, 0, 1, 0], [], []>} : vector<40x8xf32>, vector<40x8xf32>, vector<40x40xf32> -> vector<40x40xf32>
    %62 = vector.broadcast %3 : vector<1x40xf32> to vector<40x40xf32>
    %63 = arith.addf %61, %62 : vector<40x40xf32>
    %cst_39 = arith.constant dense<0xFF800000> : vector<40xf32>
    %64 = vector.multi_reduction <maximumf>, %63, %cst_39 [1] : vector<40x40xf32> to vector<40xf32>
    %65 = vector.shape_cast %64 : vector<40xf32> to vector<40x1xf32>
    %66 = vector.broadcast %65 : vector<40x1xf32> to vector<40x40xf32>
    %67 = arith.subf %63, %66 : vector<40x40xf32>
    %68 = math.exp %67 : vector<40x40xf32>
    %cst_40 = arith.constant dense<0.000000e+00> : vector<40xf32>
    %69 = vector.multi_reduction <add>, %68, %cst_40 [1] : vector<40x40xf32> to vector<40xf32>
    %70 = vector.shape_cast %69 : vector<40xf32> to vector<40x1xf32>
    %71 = tpu.reciprocal %70 {approx = true} : vector<40x1xf32> -> vector<40x1xf32>
    %72 = vector.broadcast %71 : vector<40x1xf32> to vector<40x40xf32>
    %73 = arith.mulf %68, %72 : vector<40x40xf32>
    %cst_41 = arith.constant dense<0.000000e+00> : vector<40x8xf32>
    %74 = tpu.matmul %73, %60, %cst_41 {dimension_numbers = #tpu.dot_dimension_numbers<[1], [0], [0], [1], [0, 0, 1, 1], [], []>} : vector<40x40xf32>, vector<40x8xf32>, vector<40x8xf32> -> vector<40x8xf32>
    %75 = vector.extract_strided_slice %40 {offsets = [0, 16], sizes = [40, 8], strides = [1, 1]} : vector<40x96xf32> to vector<40x8xf32>
    %76 = vector.extract_strided_slice %40 {offsets = [0, 48], sizes = [40, 8], strides = [1, 1]} : vector<40x96xf32> to vector<40x8xf32>
    %77 = vector.extract_strided_slice %40 {offsets = [0, 80], sizes = [40, 8], strides = [1, 1]} : vector<40x96xf32> to vector<40x8xf32>
    %cst_42 = arith.constant dense<0.000000e+00> : vector<40x40xf32>
    %78 = tpu.matmul %75, %76, %cst_42 {dimension_numbers = #tpu.dot_dimension_numbers<[1], [1], [0], [0], [0, 0, 1, 0], [], []>} : vector<40x8xf32>, vector<40x8xf32>, vector<40x40xf32> -> vector<40x40xf32>
    %79 = vector.broadcast %3 : vector<1x40xf32> to vector<40x40xf32>
    %80 = arith.addf %78, %79 : vector<40x40xf32>
    %cst_43 = arith.constant dense<0xFF800000> : vector<40xf32>
    %81 = vector.multi_reduction <maximumf>, %80, %cst_43 [1] : vector<40x40xf32> to vector<40xf32>
    %82 = vector.shape_cast %81 : vector<40xf32> to vector<40x1xf32>
    %83 = vector.broadcast %82 : vector<40x1xf32> to vector<40x40xf32>
    %84 = arith.subf %80, %83 : vector<40x40xf32>
    %85 = math.exp %84 : vector<40x40xf32>
    %cst_44 = arith.constant dense<0.000000e+00> : vector<40xf32>
    %86 = vector.multi_reduction <add>, %85, %cst_44 [1] : vector<40x40xf32> to vector<40xf32>
    %87 = vector.shape_cast %86 : vector<40xf32> to vector<40x1xf32>
    %88 = tpu.reciprocal %87 {approx = true} : vector<40x1xf32> -> vector<40x1xf32>
    %89 = vector.broadcast %88 : vector<40x1xf32> to vector<40x40xf32>
    %90 = arith.mulf %85, %89 : vector<40x40xf32>
    %cst_45 = arith.constant dense<0.000000e+00> : vector<40x8xf32>
    %91 = tpu.matmul %90, %77, %cst_45 {dimension_numbers = #tpu.dot_dimension_numbers<[1], [0], [0], [1], [0, 0, 1, 1], [], []>} : vector<40x40xf32>, vector<40x8xf32>, vector<40x8xf32> -> vector<40x8xf32>
    %92 = vector.extract_strided_slice %40 {offsets = [0, 24], sizes = [40, 8], strides = [1, 1]} : vector<40x96xf32> to vector<40x8xf32>
    %93 = vector.extract_strided_slice %40 {offsets = [0, 56], sizes = [40, 8], strides = [1, 1]} : vector<40x96xf32> to vector<40x8xf32>
    %94 = vector.extract_strided_slice %40 {offsets = [0, 88], sizes = [40, 8], strides = [1, 1]} : vector<40x96xf32> to vector<40x8xf32>
    %cst_46 = arith.constant dense<0.000000e+00> : vector<40x40xf32>
    %95 = tpu.matmul %92, %93, %cst_46 {dimension_numbers = #tpu.dot_dimension_numbers<[1], [1], [0], [0], [0, 0, 1, 0], [], []>} : vector<40x8xf32>, vector<40x8xf32>, vector<40x40xf32> -> vector<40x40xf32>
    %96 = vector.broadcast %3 : vector<1x40xf32> to vector<40x40xf32>
    %97 = arith.addf %95, %96 : vector<40x40xf32>
    %cst_47 = arith.constant dense<0xFF800000> : vector<40xf32>
    %98 = vector.multi_reduction <maximumf>, %97, %cst_47 [1] : vector<40x40xf32> to vector<40xf32>
    %99 = vector.shape_cast %98 : vector<40xf32> to vector<40x1xf32>
    %100 = vector.broadcast %99 : vector<40x1xf32> to vector<40x40xf32>
    %101 = arith.subf %97, %100 : vector<40x40xf32>
    %102 = math.exp %101 : vector<40x40xf32>
    %cst_48 = arith.constant dense<0.000000e+00> : vector<40xf32>
    %103 = vector.multi_reduction <add>, %102, %cst_48 [1] : vector<40x40xf32> to vector<40xf32>
    %104 = vector.shape_cast %103 : vector<40xf32> to vector<40x1xf32>
    %105 = tpu.reciprocal %104 {approx = true} : vector<40x1xf32> -> vector<40x1xf32>
    %106 = vector.broadcast %105 : vector<40x1xf32> to vector<40x40xf32>
    %107 = arith.mulf %102, %106 : vector<40x40xf32>
    %cst_49 = arith.constant dense<0.000000e+00> : vector<40x8xf32>
    %108 = tpu.matmul %107, %94, %cst_49 {dimension_numbers = #tpu.dot_dimension_numbers<[1], [0], [0], [1], [0, 0, 1, 1], [], []>} : vector<40x40xf32>, vector<40x8xf32>, vector<40x8xf32> -> vector<40x8xf32>
    %109 = tpu.concatenate %57, %74, %91, %108 in 1 : vector<40x8xf32>, vector<40x8xf32>, vector<40x8xf32>, vector<40x8xf32> -> vector<40x32xf32>
    %cst_50 = arith.constant dense<0.000000e+00> : vector<40x32xf32>
    %110 = tpu.matmul %109, %9, %cst_50 {dimension_numbers = #tpu.dot_dimension_numbers<[1], [0], [0], [1], [0, 0, 1, 1], [], []>} : vector<40x32xf32>, vector<32x32xf32>, vector<40x32xf32> -> vector<40x32xf32>
    %111 = vector.broadcast %11 : vector<1x32xf32> to vector<40x32xf32>
    %112 = arith.addf %110, %111 : vector<40x32xf32>
    %113 = arith.addf %1, %112 : vector<40x32xf32>
    %cst_51 = arith.constant dense<0.000000e+00> : vector<40xf32>
    %114 = vector.multi_reduction <add>, %113, %cst_51 [1] : vector<40x32xf32> to vector<40xf32>
    %115 = vector.shape_cast %114 : vector<40xf32> to vector<40x1xf32>
    %cst_52 = arith.constant 3.200000e+01 : f32
    %116 = vector.broadcast %cst_52 : f32 to vector<40x1xf32>
    %117 = arith.divf %115, %116 : vector<40x1xf32>
    %118 = vector.broadcast %117 : vector<40x1xf32> to vector<40x32xf32>
    %119 = arith.subf %113, %118 : vector<40x32xf32>
    %120 = arith.mulf %119, %119 : vector<40x32xf32>
    %cst_53 = arith.constant dense<0.000000e+00> : vector<40xf32>
    %121 = vector.multi_reduction <add>, %120, %cst_53 [1] : vector<40x32xf32> to vector<40xf32>
    %122 = vector.shape_cast %121 : vector<40xf32> to vector<40x1xf32>
    %cst_54 = arith.constant 3.200000e+01 : f32
    %123 = vector.broadcast %cst_54 : f32 to vector<40x1xf32>
    %124 = arith.divf %122, %123 : vector<40x1xf32>
    %125 = vector.broadcast %117 : vector<40x1xf32> to vector<40x32xf32>
    %126 = arith.subf %113, %125 : vector<40x32xf32>
    %cst_55 = arith.constant 9.99999974E-6 : f32
    %127 = vector.broadcast %cst_55 : f32 to vector<40x1xf32>
    %128 = arith.addf %124, %127 : vector<40x1xf32>
    %129 = math.rsqrt %128 : vector<40x1xf32>
    %130 = vector.broadcast %129 : vector<40x1xf32> to vector<40x32xf32>
    %131 = arith.mulf %126, %130 : vector<40x32xf32>
    %cst_56 = arith.constant dense<0.000000e+00> : vector<40x64xf32>
    %132 = tpu.matmul %131, %13, %cst_56 {dimension_numbers = #tpu.dot_dimension_numbers<[1], [0], [0], [1], [0, 0, 1, 1], [], []>} : vector<40x32xf32>, vector<32x64xf32>, vector<40x64xf32> -> vector<40x64xf32>
    %133 = vector.broadcast %15 : vector<1x64xf32> to vector<40x64xf32>
    %134 = arith.addf %132, %133 : vector<40x64xf32>
    %cst_57 = arith.constant 0.000000e+00 : f32
    %135 = vector.broadcast %cst_57 : f32 to vector<40x64xf32>
    %136 = arith.subf %135, %134 : vector<40x64xf32>
    %137 = math.exp %136 : vector<40x64xf32>
    %cst_58 = arith.constant 1.000000e+00 : f32
    %138 = vector.broadcast %cst_58 : f32 to vector<40x64xf32>
    %139 = arith.addf %138, %137 : vector<40x64xf32>
    %140 = arith.divf %134, %139 : vector<40x64xf32>
    %cst_59 = arith.constant dense<0.000000e+00> : vector<40x32xf32>
    %141 = tpu.matmul %140, %17, %cst_59 {dimension_numbers = #tpu.dot_dimension_numbers<[1], [0], [0], [1], [0, 0, 1, 1], [], []>} : vector<40x64xf32>, vector<64x32xf32>, vector<40x32xf32> -> vector<40x32xf32>
    %142 = arith.addf %113, %141 : vector<40x32xf32>
    %143 = vector.broadcast %19 : vector<1x32xf32> to vector<40x32xf32>
    %144 = arith.addf %142, %143 : vector<40x32xf32>
    %c0_60 = arith.constant 0 : index
    %c0_61 = arith.constant 0 : index
    %145 = vector.load %arg11[%c0_60, %c0_61] : memref<32x32xf32, #tpu.memory_space<vmem>>, vector<32x32xf32>
    %146 = vector.extract_strided_slice %144 {offsets = [0, 0], sizes = [1, 32], strides = [1, 1]} : vector<40x32xf32> to vector<1x32xf32>
    %cst_62 = arith.constant dense<0.000000e+00> : vector<1xf32>
    %147 = vector.multi_reduction <add>, %146, %cst_62 [1] : vector<1x32xf32> to vector<1xf32>
    %148 = vector.shape_cast %147 : vector<1xf32> to vector<1x1xf32>
    %cst_63 = arith.constant 3.200000e+01 : f32
    %149 = vector.broadcast %cst_63 : f32 to vector<1x1xf32>
    %150 = arith.divf %148, %149 : vector<1x1xf32>
    %151 = vector.broadcast %150 : vector<1x1xf32> to vector<1x32xf32>
    %152 = arith.subf %146, %151 : vector<1x32xf32>
    %153 = arith.mulf %152, %152 : vector<1x32xf32>
    %cst_64 = arith.constant dense<0.000000e+00> : vector<1xf32>
    %154 = vector.multi_reduction <add>, %153, %cst_64 [1] : vector<1x32xf32> to vector<1xf32>
    %155 = vector.shape_cast %154 : vector<1xf32> to vector<1x1xf32>
    %cst_65 = arith.constant 3.200000e+01 : f32
    %156 = vector.broadcast %cst_65 : f32 to vector<1x1xf32>
    %157 = arith.divf %155, %156 : vector<1x1xf32>
    %158 = vector.broadcast %150 : vector<1x1xf32> to vector<1x32xf32>
    %159 = arith.subf %146, %158 : vector<1x32xf32>
    %cst_66 = arith.constant 9.99999974E-6 : f32
    %160 = vector.broadcast %cst_66 : f32 to vector<1x1xf32>
    %161 = arith.addf %157, %160 : vector<1x1xf32>
    %162 = math.rsqrt %161 : vector<1x1xf32>
    %163 = vector.broadcast %162 : vector<1x1xf32> to vector<1x32xf32>
    %164 = arith.mulf %159, %163 : vector<1x32xf32>
    %cst_67 = arith.constant dense<0.000000e+00> : vector<1x32xf32>
    %165 = tpu.matmul %164, %145, %cst_67 {dimension_numbers = #tpu.dot_dimension_numbers<[1], [0], [0], [1], [0, 0, 1, 1], [], []>} : vector<1x32xf32>, vector<32x32xf32>, vector<1x32xf32> -> vector<1x32xf32>
    %c0_68 = arith.constant 0 : index
    %c0_69 = arith.constant 0 : index
    %c0_70 = arith.constant 0 : index
    %166 = vector.load %arg12[%c0_68, %c0_69, %c0_70] : memref<1x1x32xf32, #tpu.memory_space<vmem>>, vector<1x1x32xf32>
    %167 = vector.shape_cast %166 : vector<1x1x32xf32> to vector<1x32xf32>
    %168 = vector.shape_cast %165 : vector<1x32xf32> to vector<1x1x32xf32>
    tpu.vector_store %arg12[%c0_68, %c0_69, %c0_70], %168 {strides = array<i32>} : memref<1x1x32xf32, #tpu.memory_space<vmem>>, vector<1x1x32xf32>,
    return
  }
  func.func @transform_0(%arg0: i32) -> (i32, i32, i32) {
    %c0_i32 = arith.constant 0 : i32
    %c0_i32_0 = arith.constant 0 : i32
    %c0_i32_1 = arith.constant 0 : i32
    return %arg0, %c0_i32, %c0_i32_0 : i32, i32, i32
  }
  func.func @transform_1(%arg0: i32) -> (i32, i32, i32) {
    %c0_i32 = arith.constant 0 : i32
    %c0_i32_0 = arith.constant 0 : i32
    %c0_i32_1 = arith.constant 0 : i32
    return %arg0, %c0_i32, %c0_i32_0 : i32, i32, i32
  }
  func.func @transform_2(%arg0: i32) -> (i32, i32, i32) {
    %c0_i32 = arith.constant 0 : i32
    %c0_i32_0 = arith.constant 0 : i32
    %c0_i32_1 = arith.constant 0 : i32
    %c0_i32_2 = arith.constant 0 : i32
    return %c0_i32, %c0_i32_0, %c0_i32_1 : i32, i32, i32
  }
  func.func @transform_3(%arg0: i32) -> (i32, i32, i32) {
    %c0_i32 = arith.constant 0 : i32
    %c0_i32_0 = arith.constant 0 : i32
    %c0_i32_1 = arith.constant 0 : i32
    %c0_i32_2 = arith.constant 0 : i32
    return %c0_i32, %c0_i32_0, %c0_i32_1 : i32, i32, i32
  }
  func.func @transform_4(%arg0: i32) -> (i32, i32, i32) {
    %c0_i32 = arith.constant 0 : i32
    %c0_i32_0 = arith.constant 0 : i32
    %c0_i32_1 = arith.constant 0 : i32
    %c0_i32_2 = arith.constant 0 : i32
    return %c0_i32, %c0_i32_0, %c0_i32_1 : i32, i32, i32
  }
  func.func @transform_5(%arg0: i32) -> (i32, i32, i32) {
    %c0_i32 = arith.constant 0 : i32
    %c0_i32_0 = arith.constant 0 : i32
    %c0_i32_1 = arith.constant 0 : i32
    %c0_i32_2 = arith.constant 0 : i32
    return %c0_i32, %c0_i32_0, %c0_i32_1 : i32, i32, i32
  }
  func.func @transform_6(%arg0: i32) -> (i32, i32, i32) {
    %c0_i32 = arith.constant 0 : i32
    %c0_i32_0 = arith.constant 0 : i32
    %c0_i32_1 = arith.constant 0 : i32
    %c0_i32_2 = arith.constant 0 : i32
    return %c0_i32, %c0_i32_0, %c0_i32_1 : i32, i32, i32
  }
  func.func @transform_7(%arg0: i32) -> (i32, i32, i32) {
    %c0_i32 = arith.constant 0 : i32
    %c0_i32_0 = arith.constant 0 : i32
    %c0_i32_1 = arith.constant 0 : i32
    %c0_i32_2 = arith.constant 0 : i32
    return %c0_i32, %c0_i32_0, %c0_i32_1 : i32, i32, i32
  }
  func.func @transform_8(%arg0: i32) -> (i32, i32, i32) {
    %c0_i32 = arith.constant 0 : i32
    %c0_i32_0 = arith.constant 0 : i32
    %c0_i32_1 = arith.constant 0 : i32
    %c0_i32_2 = arith.constant 0 : i32
    return %c0_i32, %c0_i32_0, %c0_i32_1 : i32, i32, i32
  }
  func.func @transform_9(%arg0: i32) -> (i32, i32, i32) {
    %c0_i32 = arith.constant 0 : i32
    %c0_i32_0 = arith.constant 0 : i32
    %c0_i32_1 = arith.constant 0 : i32
    %c0_i32_2 = arith.constant 0 : i32
    return %c0_i32, %c0_i32_0, %c0_i32_1 : i32, i32, i32
  }
  func.func @transform_10(%arg0: i32) -> (i32, i32) {
    %c0_i32 = arith.constant 0 : i32
    %c0_i32_0 = arith.constant 0 : i32
    %c0_i32_1 = arith.constant 0 : i32
    return %c0_i32, %c0_i32_0 : i32, i32
  }
  func.func @transform_11(%arg0: i32) -> (i32, i32, i32) {
    %c0_i32 = arith.constant 0 : i32
    %c0_i32_0 = arith.constant 0 : i32
    %c0_i32_1 = arith.constant 0 : i32
    return %arg0, %c0_i32, %c0_i32_0 : i32, i32, i32
  }
}

</mosaic_0001>

<bundles_post_ra>
// kernel: encoder_forward.1
= control target key start
LH: loop header
LB: loop body
LE: loop exit
PB: predicated region body
PF: predicated region fallthrough
CT: control target
= control target key end

     0   :  { %s3042_s0 = inlined_call_operand.vmem [shape: f32[2,40,32], index: 0, kind: input, shape index: {}]   ;;  %s3043_s1 = inlined_call_operand.vmem [shape: f32[2,1,40], index: 1, kind: input, shape index: {}]   ;;  %s3044_s2 = inlined_call_operand.vmem [shape: f32[1,32,96], index: 2, kind: input, shape index: {}]   ;;  %s3045_s3 = inlined_call_operand.vmem [shape: f32[1,1,96], index: 3, kind: input, shape index: {}]   ;;  %s3046_s4 = inlined_call_operand.vmem [shape: f32[1,32,32], index: 4, kind: input, shape index: {}]   ;;  %s3047_s5 = inlined_call_operand.vmem [shape: f32[1,1,32], index: 5, kind: input, shape index: {}]   ;;  %s3048_s6 = inlined_call_operand.vmem [shape: f32[1,32,64], index: 6, kind: input, shape index: {}]   ;;  %s3049_s7 = inlined_call_operand.vmem [shape: f32[1,1,64], index: 7, kind: input, shape index: {}]   ;;  %s3050_s8 = inlined_call_operand.vmem [shape: f32[1,64,32], index: 8, kind: input, shape index: {}]   ;;  %s3051_s9 = inlined_call_operand.vmem [shape: f32[1,1,32], index: 9, kind: input, shape index: {}]   ;;  %s3052_s10 = inlined_call_operand.vmem [shape: f32[32,32], index: 10, kind: input, shape index: {}]   ;;  %s3053_s11 = inlined_call_operand.hbm [shape: f32[2,1,32], index: 11, kind: output, shape index: {}]  }
   0x1   :  { %3058 = sst [smem:[#allocation5_spill]] %s3042_s0 }
   0x2   :  { %3059 = sst [smem:[#allocation6_spill]] %s3043_s1 }
   0x3   :  { %16 = vsyncpa [#allocation3], 0 }
   0x4   :  { %18 = vsyncpa [#allocation3 + $0x1], 0  ;;  %s2372_s17 = smov 0   ;;  %s2374_s18 = smov 0  }
   0x5   :  { %s2376_s19 = smov 0   ;;  %s2378_s20 = smov 0  }
   0x6 LB: > { %s2393_s21 = sadd.s32 4294967295, %s2295_s20   ;;  %s1916_s22 = sadd.s32 4294967294, %s2295_s20   ;;  %s2295_s20 = sphi %s2378_s20, %s3070_s20   ;;  %s2291_s19 = sphi %s2376_s19, %s3069_s19   ;;  %s2287_s18 = sphi %s2374_s18, %s3068_s18   ;;  %s2283_s17 = sphi %s2372_s17, %s3067_s17  }
   0x7   : > { %s2397_s23 = sadd.s32 1, %s2295_s20   ;;  %s272_s24 = sadd.s32 1, %s2291_s19 }
   0x8   : > { %s269_s25 = ssub.s32 %s2295_s20, %s2397_s23  ;;  %p282_p0 = scmp.ne.s32.totalorder %s2291_s19, %s2287_s18 }
   0x9   : > { %p270_p1 = scmp.eq.s32.totalorder %s269_s25, 0  ;;  %p283_p2 = scmp.eq.s32.totalorder %s2393_s21, 1 }
   0xa   : > { %p288_p3 = scmp.ne.s32.totalorder %s2287_s18, %s2283_s17  ;;  %p289_p4 = scmp.eq.s32.totalorder %s1916_s22, 1 }
   0xb   : > { %s2408_s26 = scalar_select %p270_p1, %s2291_s19, %s272_s24  }
   0xc   : > { %p2410_p5 = por %p283_p2, %p282_p0  ;;  %p2414_p6 = por %p289_p4, %p288_p3 }
   0xd   : > { %p1919_p7 = scmp.ge.s32.totalorder %s2295_s20, 1  ;;  %p348_p8 = scmp.lt.s32.totalorder %s2295_s20, 3 }
   0xf   : > { %p349_p9 = pnand %p1919_p7, %p348_p8 }
  0x10   : > { %p390_p10 = scmp.lt.s32.totalorder (!%p349_p9), %s2393_s21, 1  ;;  %s3062_s1 = sld [smem:[#allocation6_spill]] (!%p349_p9) }
  0x11   : > { %352 = sbr.rel (%p349_p9) target bundleno = 2922 (0xb6a), region = 64  ;;  %s3063_s0 = sld [smem:[#allocation5_spill]] (!%p349_p9) }
  0x12   : > { %s2298_s25 = smov (!%p349_p9), 96   ;;  %s2300_s12 = smov (!%p349_p9), 64  }
  0x13   : > { %s2301_s13 = smov (!%p349_p9), 120   ;;  %s2303_s24 = smov (!%p349_p9), 72  }
  0x14   : > { %s2308_s15 = smov (!%p349_p9), 40   ;;  %s2309_s16 = smov (!%p349_p9), 8  }
  0x16   : > { %s2422_s29 = scalar_select %p390_p10, %s2393_s21, 1  ;;  %vm428_vm0 = vcmask 261120   ;;  %v2297_v10 = vmov 32.0   ;;  %v407_v42 = vld [vmem:[%s3044_s2 + $0x18] sm:$0xff]  ;;  %v406_v43 = vld [vmem:[%s3044_s2 + $0x10] sm:$0xff]  ;;  %v405_v44 = vld [vmem:[%s3044_s2 + $0x8] sm:$0xff] }
  0x17   : > { %2104 = vrcp.f32 %v2297_v10  ;;  %576 = vmatpush.msra.mxu0 %v407_v42  ;;  %v404_v45 = vld [vmem:[%s3044_s2] sm:$0xff] }
  0x18   : > { %s2004_s30 = smul.u32 40, %s2422_s29  ;;  %v2100_v42 = vld [vmem:[%s3045_s3] ss:$0 sm:$0xff]  ;;  %s3064_s14 = scalar_lea.vmem %s3062_s1, %s2422_s29 }
  0x19   : > { %577 = vmatpush.msra.mxu0 %v406_v43  ;;  %s2302_s29 = smov 80  }
  0x1a   : > { %s2432_s22 = scalar_lea.vmem %s3063_s0, %s2004_s30  ;;  %s2299_s30 = smov 88  }
  0x1b   : > { %v400_v0 = vld [vmem:[%s2432_s22 + $0x10] sm:$0xff]  ;;  %v398_v1 = vld [vmem:[%s2432_s22] sm:$0xff]  ;;  %v401_v6 = vld [vmem:[%s2432_s22 + $0x18] sm:$0xff]  ;;  %578 = vmatpush.msra.mxu0 %v405_v44 }
  0x1c   : > { %v435_v2 = vsel %vm428_vm0, %v400_v0, 0.0  ;;  %v429_v3 = vsel %vm428_vm0, %v398_v1, 0.0  ;;  %v402_v4 = vld [vmem:[%s2432_s22 + $0x20] sm:$0xff]  ;;  %v399_v7 = vld [vmem:[%s2432_s22 + $0x8] sm:$0xff]  ;;  %v438_v8 = vsel %vm428_vm0, %v401_v6, 0.0 }
  0x1d   : > { %436 = vadd.xlane.f32.xlu1 %v435_v2  ;;  %430 = vadd.xlane.f32.xlu0 %v429_v3  ;;  %v441_v5 = vsel %vm428_vm0, %v402_v4, 0.0  ;;  %v432_v9 = vsel %vm428_vm0, %v399_v7, 0.0  ;;  %v2105_v11 = vpop.eup %2104 }
  0x1e   : > { %442 = vadd.xlane.f32.xlu2 %v441_v5  ;;  %v445_v12 = vmul.f32 32.0, %v2105_v11  ;;  %vm449_vm1 = vweird.f32 %v2105_v11  ;;  %579 = vmatpush.msra.mxu0 %v404_v45 }
  0x20   : > { %v446_v13 = vsub.f32 1.0, %v445_v12 }
  0x22   : > { %v447_v14 = vmul.f32 %v2105_v11, %v446_v13 }
  0x24   : > { %v448_v15 = vadd.f32 %v2105_v11, %v447_v14 }
  0x25   : > { %439 = vadd.xlane.f32.xlu1 %v438_v8  ;;  %433 = vadd.xlane.f32.xlu0 %v432_v9 }
  0x26   : > { %v2444_v16 = vsel %vm449_vm1, %v2105_v11, %v448_v15 }
  0x90   : > { %v437_v17 = vpop.xlane.xlu1 %436  ;;  %v431_v18 = vpop.xlane.xlu0 %430 }
  0x91   : > { %v453_v19 = vmul.f32 %v2444_v16, %v437_v17  ;;  %v451_v20 = vmul.f32 %v2444_v16, %v431_v18  ;;  %v443_v25 = vpop.xlane.xlu2 %442 }
  0x92   : > { %v455_v32 = vmul.f32 %v2444_v16, %v443_v25 }
  0x93   : > { %v2448_v21 = vsub.f32 %v400_v0, %v453_v19  ;;  %v2450_v22 = vsub.f32 %v398_v1, %v451_v20 }
  0x94   : > { %v2465_v35 = vsub.f32 %v402_v4, %v455_v32 }
  0x95   : > { %v463_v23 = vmul.f32 %v2448_v21, %v2448_v21  ;;  %v461_v24 = vmul.f32 %v2450_v22, %v2450_v22 }
  0x96   : > { %v465_v40 = vmul.f32 %v2465_v35, %v2465_v35 }
  0x97   : > { %v472_v26 = vsel %vm428_vm0, %v463_v23, 0.0  ;;  %v466_v27 = vsel %vm428_vm0, %v461_v24, 0.0 }
  0x98   : > { %473 = vadd.xlane.f32.xlu1 %v472_v26  ;;  %v440_v28 = vpop.xlane.xlu1 %439  ;;  %467 = vadd.xlane.f32.xlu2 %v466_v27  ;;  %v434_v29 = vpop.xlane.xlu0 %433  ;;  %v478_v41 = vsel %vm428_vm0, %v465_v40, 0.0 }
  0x99   : > { %v454_v30 = vmul.f32 %v2444_v16, %v440_v28  ;;  %v452_v31 = vmul.f32 %v2444_v16, %v434_v29 }
  0x9b   : > { %v2461_v33 = vsub.f32 %v401_v6, %v454_v30  ;;  %v2463_v34 = vsub.f32 %v399_v7, %v452_v31 }
  0x9d   : > { %v464_v36 = vmul.f32 %v2461_v33, %v2461_v33  ;;  %v462_v37 = vmul.f32 %v2463_v34, %v2463_v34 }
  0x9f   : > { %v475_v38 = vsel %vm428_vm0, %v464_v36, 0.0  ;;  %v469_v39 = vsel %vm428_vm0, %v462_v37, 0.0 }
  0xa0   : > { %476 = vadd.xlane.f32.xlu2 %v475_v38  ;;  %470 = vadd.xlane.f32.xlu0 %v469_v39 }
  0xa8   : > { %479 = vadd.xlane.f32.xlu0 %v478_v41 }
 0x10b   : > { %v474_v46 = vpop.xlane.xlu1 %473  ;;  %v468_v47 = vpop.xlane.xlu2 %467 }
 0x10c   : > { %v483_v48 = vmul.f32 %v474_v46, %v2444_v16  ;;  %v481_v49 = vmul.f32 %v468_v47, %v2444_v16 }
 0x10e   : > { %v486_v50 = vadd.f32 1e-05, %v481_v49  ;;  %v488_v51 = vadd.f32 1e-05, %v483_v48 }
 0x110   : > { %2106 = vrsqrt.f32 %v486_v50  ;;  %vm497_vm3 = vweird.f32 %v486_v50  ;;  %vm517_vm8 = vweird.f32 %v488_v51 }
 0x111   : > { %2108 = vrsqrt.f32 %v488_v51 }
 0x113   : > { %v477_v52 = vpop.xlane.xlu2 %476  ;;  %v471_v53 = vpop.xlane.xlu0 %470 }
 0x114   : > { %v484_v54 = vmul.f32 %v477_v52, %v2444_v16  ;;  %v482_v55 = vmul.f32 %v471_v53, %v2444_v16 }
 0x116   : > { %v487_v56 = vadd.f32 1e-05, %v482_v55  ;;  %v2107_v57 = vpop.eup %2106  ;;  %v489_v59 = vadd.f32 1e-05, %v484_v54 }
 0x117   : > { %v492_v58 = vmul.f32 %v2107_v57, %v486_v50  ;;  %v2109_v60 = vpop.eup %2108  ;;  %vm498_vm2 = vweird.f32 %v2107_v57 }
 0x118   : > { %2110 = vrsqrt.f32 %v487_v56  ;;  %v512_v1 = vmul.f32 %v2109_v60, %v488_v51  ;;  %vm499_vm4 = vmor %vm497_vm3, %vm498_vm2  ;;  %vm507_vm6 = vweird.f32 %v487_v56  ;;  %vm518_vm9 = vweird.f32 %v2109_v60 }
 0x119   : > { %v493_v61 = vmul.f32 %v2107_v57, %v492_v58  ;;  %2112 = vrsqrt.f32 %v489_v59  ;;  %vm519_vm10 = vmor %vm517_vm8, %vm518_vm9  ;;  %vm527_vm11 = vweird.f32 %v489_v59  ;;  %vm614_vm2 = vcmask 64512  }
 0x11a   : > { %v513_v6 = vmul.f32 %v2109_v60, %v512_v1  ;;  %vm667_vm3 = vcmask 326656  }
 0x11b   : > { %v480_v62 = vpop.xlane.xlu0 %479  ;;  %v494_v63 = vmul.f32 0.5, %v493_v61 }
 0x11c   : > { %v485_v0 = vmul.f32 %v480_v62, %v2444_v16  ;;  %v514_v13 = vmul.f32 0.5, %v513_v6  ;;  %v2568_v6 = vld [vmem:[%s3064_s14] ss:$0 sm:$0xff]  ;;  %s3054_s14 = smov 24  }
 0x11d   : > { %v495_v2 = vsub.f32 1.5, %v494_v63 }
 0x11e   : > { %v2111_v3 = vpop.eup %2110  ;;  %v490_v5 = vadd.f32 1e-05, %v485_v0  ;;  %v515_v18 = vsub.f32 1.5, %v514_v13 }
 0x11f   : > { %v502_v4 = vmul.f32 %v2111_v3, %v487_v56  ;;  %v496_v7 = vmul.f32 %v2107_v57, %v495_v2  ;;  %v2113_v8 = vpop.eup %2112  ;;  %vm508_vm5 = vweird.f32 %v2111_v3 }
 0x120   : > { %2114 = vrsqrt.f32 %v490_v5  ;;  %v522_v14 = vmul.f32 %v2113_v8, %v489_v59  ;;  %vm509_vm7 = vmor %vm507_vm6, %vm508_vm5  ;;  %vm528_vm12 = vweird.f32 %v2113_v8  ;;  %vm537_vm14 = vweird.f32 %v490_v5 }
 0x121   : > { %v503_v9 = vmul.f32 %v2111_v3, %v502_v4  ;;  %v500_v10 = vsel %vm499_vm4, %v2107_v57, %v496_v7  ;;  %vm529_vm13 = vmor %vm527_vm11, %vm528_vm12  ;;  %vm1417_vm4 = vcmask 130048   ;;  %vm1423_vm5 = vcmask 195584  }
 0x122   : > { %v541_v12 = vmul.f32 %v500_v10, %v2450_v22  ;;  %v523_v19 = vmul.f32 %v2113_v8, %v522_v14  ;;  %v516_v22 = vmul.f32 %v2109_v60, %v515_v18 }
 0x123   : > { %v504_v11 = vmul.f32 0.5, %v503_v9 }
 0x124   : > { %1921 = vmatmul.msk.f32.vlgmr.msra.gmra.mxu0 %vm428_vm0, %v541_v12  ;;  %v524_v25 = vmul.f32 0.5, %v523_v19  ;;  %v520_v29 = vsel %vm519_vm10, %v2109_v60, %v516_v22 }
 0x125   : > { %v505_v15 = vsub.f32 1.5, %v504_v11  ;;  %v543_v30 = vmul.f32 %v520_v29, %v2448_v21 }
 0x126   : > { %v2115_v20 = vpop.eup %2114  ;;  %v525_v27 = vsub.f32 1.5, %v524_v25 }
 0x127   : > { %v506_v17 = vmul.f32 %v2111_v3, %v505_v15  ;;  %v532_v26 = vmul.f32 %v2115_v20, %v490_v5  ;;  %vm538_vm15 = vweird.f32 %v2115_v20 }
 0x128   : > { %v526_v32 = vmul.f32 %v2113_v8, %v525_v27  ;;  %vm539_vm1 = vmor %vm537_vm14, %vm538_vm15 }
 0x129   : > { %v510_v23 = vsel %vm509_vm7, %v2111_v3, %v506_v17  ;;  %v533_v28 = vmul.f32 %v2115_v20, %v532_v26 }
 0x12a   : > { %v542_v24 = vmul.f32 %v510_v23, %v2463_v34  ;;  %v530_v34 = vsel %vm529_vm13, %v2113_v8, %v526_v32  ;;  %vm1739_vm13 = vcmask 523264  }
 0x12b   : > { %v534_v31 = vmul.f32 0.5, %v533_v28  ;;  %v544_v37 = vmul.f32 %v530_v34, %v2461_v33 }
 0x12c   : > { %1922 = vmatmul.msk.f32.gmra.mxu0 %vm428_vm0, %v542_v24 }
 0x12d   : > { %v535_v36 = vsub.f32 1.5, %v534_v31 }
 0x12f   : > { %v536_v38 = vmul.f32 %v2115_v20, %v535_v36 }
 0x131   : > { %v540_v39 = vsel %vm539_vm1, %v2115_v20, %v536_v38 }
 0x132   : > { %v545_v40 = vmul.f32 %v540_v39, %v2465_v35 }
 0x134   : > { %1923 = vmatmul.msk.f32.gmra.mxu0 %vm428_vm0, %v543_v30 }
 0x13c   : > { %1924 = vmatmul.msk.f32.gmra.mxu0 %vm428_vm0, %v544_v37 }
 0x144   : > { %1925 = vmatmul.msk.f32.gmra.mxu0 %vm428_vm0, %v545_v40 }
 0x1a1   : > { %v581_v21 = vpop.f32.mrf.mxu0 }
 0x1a2   : > { %v2524_v49 = vadd.f32 %v2100_v42, %v581_v21 }
 0x1a9   : > { %v584_v41 = vpop.f32.mrf.mxu0 }
 0x1aa   : > { %v2513_v35 = vadd.f32 %v2100_v42, %v584_v41 }
 0x1b1   : > { %v587_v43 = vpop.f32.mrf.mxu0 }
 0x1b2   : > { %v2506_v44 = vadd.f32 %v2100_v42, %v587_v43 }
 0x1b4   : > { %608 = vrot.lane.b32.xlu0 %v2506_v44, %s2298_s25  ;;  %v2519_v48 = vpack.i.bf16 %v2513_v35, %v2506_v44 }
 0x1b9   : > { %v590_v33 = vpop.f32.mrf.mxu0 }
 0x1ba   : > { %v2509_v45 = vadd.f32 %v2100_v42, %v590_v33 }
 0x1bc   : > { %610 = vrot.lane.b32.xlu2 %v2509_v45, %s2298_s25  ;;  %801 = vrot.lane.b32.xlu0 %v2509_v45, %s2299_s30 }
 0x1c1   : > { %v593_v46 = vpop.f32.mrf.mxu0 }
 0x1c2   : > { %v2515_v47 = vadd.f32 %v2100_v42, %v593_v46 }
 0x1c4   : > { %2060 = vrot.lane.b32.xlu0 %v2519_v48, %s2300_s12  ;;  %606 = vrot.lane.b32.xlu2 %v2513_v35, %s2298_s25  ;;  %v2531_v50 = vpack.i.bf16 %v2509_v45, %v2515_v47 }
 0x1c5   : > { %612 = vrot.lane.b32.xlu1 %v2515_v47, %s2298_s25 }
 0x1cc   : > { %723 = vrot.lane.b32.xlu0 %v2524_v49, %s2300_s12  ;;  %799 = vrot.lane.b32.xlu2 %v2506_v44, %s2299_s30 }
 0x1cd   : > { %604 = vrot.lane.b32.xlu1 %v2524_v49, %s2298_s25  ;;  %s2304_s25 = smov 104  }
 0x1d4   : > { %795 = vrot.lane.b32.xlu2 %v2524_v49, %s2299_s30  ;;  %2065 = vrot.lane.b32.xlu0 %v2531_v50, %s2300_s12  ;;  %s2306_s12 = smov 56  }
 0x1d5   : > { %797 = vrot.lane.b32.xlu1 %v2513_v35, %s2299_s30 }
 0x1dc   : > { %785 = vrot.lane.b32.xlu2 %v2524_v49, %s2301_s13 }
 0x1dd   : > { %803 = vrot.lane.b32.xlu1 %v2515_v47, %s2299_s30  ;;  %s2305_s30 = smov 112  }
 0x1e4   : > { %787 = vrot.lane.b32.xlu2 %v2513_v35, %s2301_s13 }
 0x216   : > { %v611_v55 = vpop.permute.xlu2 %610 }
 0x21e   : > { %v607_v58 = vpop.permute.xlu2 %606 }
 0x226   : > { %v609_v51 = vpop.permute.xlu0 %608  ;;  %v800_v0 = vpop.permute.xlu2 %799 }
 0x22e   : > { %v802_v52 = vpop.permute.xlu0 %801  ;;  %v796_v3 = vpop.permute.xlu2 %795 }
 0x236   : > { %v2061_v53 = vpop.permute.xlu0 %2060  ;;  %v786_v4 = vpop.permute.xlu2 %785 }
 0x237   : > { %v613_v54 = vpop.permute.xlu1 %612  ;;  %v2062_v63 = vunpack.i.l.bf16 %v2061_v53  ;;  %v2063_v1 = vunpack.i.h.bf16 %v2061_v53 }
 0x238   : > { %1926 = vmatpush.xpose.msk.msra.mxu1 %vm614_vm2, %v613_v54 }
 0x23c   : > { %1927 = vmatpush.xpose.msk.msra.mxu1 %vm614_vm2, %v611_v55 }
 0x23e   : > { %v724_v56 = vpop.permute.xlu0 %723  ;;  %v788_v5 = vpop.permute.xlu2 %787 }
 0x23f   : > { %v605_v57 = vpop.permute.xlu1 %604 }
 0x240   : > { %1928 = vmatpush.xpose.msk.msra.mxu1 %vm614_vm2, %v609_v51 }
 0x244   : > { %1929 = vmatpush.xpose.msk.msra.mxu1 %vm614_vm2, %v607_v58 }
 0x246   : > { %v2066_v59 = vpop.permute.xlu0 %2065 }
 0x247   : > { %v798_v60 = vpop.permute.xlu1 %797  ;;  %v2067_v61 = vunpack.i.l.bf16 %v2066_v59  ;;  %v2068_v62 = vunpack.i.h.bf16 %v2066_v59 }
 0x248   : > { %1930 = vmatpush.xpose.msk.msra.mxu1 %vm614_vm2, %v605_v57 }
 0x249   : > { %764 = vmatpush.msra.mxu2 %v2067_v61 }
 0x24b   : > { %1931 = vmatmul.msk.f32.vlgmr.msra.gmra.mxu1 %vm614_vm2, %v2524_v49  ;;  %765 = vmatpush.msra.mxu2 %v2068_v62 }
 0x24d   : > { %766 = vmatpush.msra.mxu2 %v2062_v63 }
 0x24f   : > { %v804_v2 = vpop.permute.xlu1 %803  ;;  %767 = vmatpush.msra.mxu2 %v2063_v1 }
 0x250   : > { %1941 = vmatpush.xpose.msk.msra.mxu3 %vm614_vm2, %v804_v2 }
 0x251   : > { %768 = vmatpush.msra.mxu2 %v724_v56 }
 0x253   : > { %1932 = vmatmul.msk.f32.gmra.mxu1 %vm614_vm2, %v2513_v35 }
 0x254   : > { %1942 = vmatpush.xpose.msk.msra.mxu3 %vm614_vm2, %v802_v52 }
 0x258   : > { %1943 = vmatpush.xpose.msk.msra.mxu3 %vm614_vm2, %v800_v0 }
 0x25b   : > { %1933 = vmatmul.msk.f32.gmra.mxu1 %vm614_vm2, %v2506_v44 }
 0x25c   : > { %1944 = vmatpush.xpose.msk.msra.mxu3 %vm614_vm2, %v798_v60 }
 0x260   : > { %1945 = vmatpush.xpose.msk.msra.mxu3 %vm614_vm2, %v796_v3 }
 0x263   : > { %1934 = vmatmul.msk.f32.gmra.mxu1 %vm614_vm2, %v2509_v45  ;;  %1946 = vmatmul.msk.f32.vlgmr.msra.gmra.mxu3 %vm614_vm2, %v786_v4 }
 0x26b   : > { %1935 = vmatmul.msk.f32.gmra.mxu1 %vm614_vm2, %v2515_v47  ;;  %1947 = vmatmul.msk.f32.gmra.mxu3 %vm614_vm2, %v788_v5 }
 0x2c8   : > { %v652_v7 = vpop.f32.mrf.mxu1 }
 0x2c9   : > { %v653_v8 = vadd.f32 %v2568_v6, %v652_v7 }
 0x2cb   : > { %v668_v9 = vsel %vm667_vm3, %v653_v8, -inf }
 0x2cc   : > { %669 = vmax.xlane.f32.xlu0 %v668_v9 }
 0x2d0   : > { %v655_v10 = vpop.f32.mrf.mxu1 }
 0x2d1   : > { %v656_v11 = vadd.f32 %v2568_v6, %v655_v10 }
 0x2d3   : > { %v671_v12 = vsel %vm667_vm3, %v656_v11, -inf }
 0x2d4   : > { %672 = vmax.xlane.f32.xlu2 %v671_v12 }
 0x2d8   : > { %v658_v13 = vpop.f32.mrf.mxu1 }
 0x2d9   : > { %v659_v14 = vadd.f32 %v2568_v6, %v658_v13 }
 0x2db   : > { %v674_v15 = vsel %vm667_vm3, %v659_v14, -inf }
 0x2dc   : > { %675 = vmax.xlane.f32.xlu1 %v674_v15 }
 0x2e0   : > { %992 = vrot.lane.b32.xlu0 %v2515_v47, %s2302_s29  ;;  %v661_v17 = vpop.f32.mrf.mxu1 }
 0x2e1   : > { %v662_v23 = vadd.f32 %v2568_v6, %v661_v17 }
 0x2e3   : > { %v677_v24 = vsel %vm667_vm3, %v662_v23, -inf }
 0x2e6   : > { %v842_v58 = vpop.f32.mrf.mxu3 }
 0x2e8   : > { %791 = vrot.lane.b32.xlu0 %v2509_v45, %s2301_s13  ;;  %v664_v18 = vpop.f32.mrf.mxu1 }
 0x2e9   : > { %v665_v19 = vadd.f32 %v2568_v6, %v664_v18  ;;  %v843_v18 = vadd.f32 %v2568_v6, %v842_v58 }
 0x2eb   : > { %v680_v20 = vsel %vm667_vm3, %v665_v19, -inf }
 0x2ec   : > { %1181 = vrot.lane.b32.xlu2 %v2515_v47, %s2303_s24 }
 0x2ee   : > { %v845_v63 = vpop.f32.mrf.mxu3 }
 0x2ef   : > { %v2624_v1 = vadd.f32 %v2568_v6, %v845_v63 }
 0x2f0   : > { %990 = vrot.lane.b32.xlu0 %v2509_v45, %s2302_s29 }
 0x2f1   : > { %v860_v3 = vsel %vm667_vm3, %v2624_v1, -inf }
 0x2f4   : > { %988 = vrot.lane.b32.xlu2 %v2506_v44, %s2302_s29 }
 0x2f5   : > { %789 = vrot.lane.b32.xlu1 %v2506_v44, %s2301_s13 }
 0x2f8   : > { %1179 = vrot.lane.b32.xlu0 %v2509_v45, %s2303_s24 }
 0x300   : > { %1177 = vrot.lane.b32.xlu0 %v2506_v44, %s2303_s24 }
 0x31d   : > { %681 = vmax.xlane.f32.xlu2 %v680_v20  ;;  %v857_v20 = vsel %vm667_vm3, %v843_v18, -inf }
 0x32a   : > { %678 = vmax.xlane.f32.xlu0 %v677_v24 }
 0x335   : > { %793 = vrot.lane.b32.xlu2 %v2515_v47, %s2301_s13  ;;  %s2307_s13 = smov 48  }
 0x33e   : > { %986 = vrot.lane.b32.xlu0 %v2513_v35, %s2302_s29 }
 0x33f   : > { %v670_v22 = vpop.xlane.xlu0 %669 }
 0x340   : > { %v683_v28 = vsub.f32 %v653_v8, %v670_v22 }
 0x342   : > { %v688_v30 = vmul.f32 1.442695, %v683_v28 }
 0x347   : > { %v673_v25 = vpop.xlane.xlu2 %672 }
 0x348   : > { %v684_v26 = vsub.f32 %v656_v11, %v673_v25 }
 0x34a   : > { %v690_v27 = vmul.f32 1.442695, %v684_v26 }
 0x34c   : > { %2116 = vpow2.f32 %v690_v27 }
 0x34d   : > { %2118 = vpow2.f32 %v688_v30 }
 0x34f   : > { %v1182_v29 = vpop.permute.xlu2 %1181  ;;  %v676_v36 = vpop.xlane.xlu1 %675 }
 0x350   : > { %1971 = vmatpush.xpose.msk.msrb.mxu3 %vm614_vm2, %v1182_v29  ;;  %v685_v37 = vsub.f32 %v659_v14, %v676_v36 }
 0x352   : > { %v2601_v31 = vpop.eup %2116  ;;  %v993_v32 = vpop.permute.xlu0 %992  ;;  %v692_v39 = vmul.f32 1.442695, %v685_v37 }
 0x353   : > { %1956 = vmatpush.xpose.msk.msrb.mxu2 %vm614_vm2, %v993_v32  ;;  %v701_v34 = vsel %vm667_vm3, %v2601_v31, 0.0  ;;  %v2119_v38 = vpop.eup %2118 }
 0x354   : > { %702 = vadd.xlane.f32.xlu1 %v701_v34  ;;  %v698_v21 = vsel %vm667_vm3, %v2119_v38, 0.0  ;;  %2120 = vpow2.f32 %v692_v39 }
 0x357   : > { %v989_v43 = vpop.permute.xlu2 %988 }
 0x35a   : > { %v792_v40 = vpop.permute.xlu0 %791  ;;  %v2121_v42 = vpop.eup %2120 }
 0x35b   : > { %v704_v46 = vsel %vm667_vm3, %v2121_v42, 0.0 }
 0x35e   : > { %699 = vadd.xlane.f32.xlu2 %v698_v21 }
 0x362   : > { %v991_v41 = vpop.permute.xlu0 %990 }
 0x363   : > { %1957 = vmatpush.xpose.msk.msrb.mxu2 %vm614_vm2, %v991_v41 }
 0x367   : > { %v790_v33 = vpop.permute.xlu1 %789  ;;  %1958 = vmatpush.xpose.msk.msrb.mxu2 %vm614_vm2, %v989_v43 }
 0x368   : > { %705 = vadd.xlane.f32.xlu0 %v704_v46  ;;  %1948 = vmatmul.msk.f32.gmra.mxu3 %vm614_vm2, %v790_v33 }
 0x36a   : > { %v1180_v51 = vpop.permute.xlu0 %1179 }
 0x36b   : > { %1972 = vmatpush.xpose.msk.msrb.mxu3 %vm614_vm2, %v1180_v51 }
 0x370   : > { %1949 = vmatmul.msk.f32.gmra.mxu3 %vm614_vm2, %v792_v40 }
 0x372   : > { %v1178_v52 = vpop.permute.xlu0 %1177 }
 0x373   : > { %1973 = vmatpush.xpose.msk.msrb.mxu3 %vm614_vm2, %v1178_v52 }
 0x37c   : > { %1173 = vrot.lane.b32.xlu0 %v2524_v49, %s2303_s24 }
 0x384   : > { %1163 = vrot.lane.b32.xlu0 %v2524_v49, %s2304_s25 }
 0x390   : > { %v682_v53 = vpop.xlane.xlu2 %681 }
 0x391   : > { %v687_v54 = vsub.f32 %v665_v19, %v682_v53 }
 0x393   : > { %v696_v55 = vmul.f32 1.442695, %v687_v54 }
 0x395   : > { %2122 = vpow2.f32 %v696_v55 }
 0x398   : > { %v794_v56 = vpop.permute.xlu2 %793 }
 0x399   : > { %1950 = vmatmul.msk.f32.gmra.mxu3 %vm614_vm2, %v794_v56 }
 0x39b   : > { %v2619_v57 = vpop.eup %2122 }
 0x39c   : > { %v710_v59 = vsel %vm667_vm3, %v2619_v57, 0.0 }
 0x39d   : > { %711 = vadd.xlane.f32.xlu1 %v710_v59  ;;  %v679_v60 = vpop.xlane.xlu0 %678 }
 0x39e   : > { %v686_v61 = vsub.f32 %v662_v23, %v679_v60 }
 0x3a0   : > { %v694_v62 = vmul.f32 1.442695, %v686_v61 }
 0x3a2   : > { %2124 = vpow2.f32 %v694_v62 }
 0x3a8   : > { %v2125_v0 = vpop.eup %2124 }
 0x3a9   : > { %v707_v2 = vsel %vm667_vm3, %v2125_v0, 0.0 }
 0x3aa   : > { %708 = vadd.xlane.f32.xlu2 %v707_v2 }
 0x3ae   : > { %861 = vmax.xlane.f32.xlu0 %v860_v3 }
 0x3b0   : > { %v987_v4 = vpop.permute.xlu0 %986 }
 0x3b1   : > { %1959 = vmatpush.xpose.msk.msrb.mxu2 %vm614_vm2, %v987_v4 }
 0x3b6   : > { %1175 = vrot.lane.b32.xlu1 %v2513_v35, %s2303_s24 }
 0x3c2   : > { %984 = vrot.lane.b32.xlu2 %v2524_v49, %s2302_s29  ;;  %s3056_s29 = smov 16  }
 0x3c7   : > { %v703_v7 = vpop.xlane.xlu1 %702 }
 0x3ca   : > { %974 = vrot.lane.b32.xlu2 %v2524_v49, %s2305_s30 }
 0x3d1   : > { %v700_v5 = vpop.xlane.xlu2 %699 }
 0x3d2   : > { %2126 = vrcp.f32 %v700_v5 }
 0x3d3   : > { %2128 = vrcp.f32 %v703_v7 }
 0x3d8   : > { %v2127_v8 = vpop.eup %2126 }
 0x3d9   : > { %v718_v9 = vmul.f32 %v2127_v8, %v2119_v38  ;;  %v2129_v11 = vpop.eup %2128 }
 0x3da   : > { %v719_v12 = vmul.f32 %v2129_v11, %v2601_v31 }
 0x3db   : > { %1936 = vmatmul.msk.f32.vlgmr.msra.gmra.mxu2 %vm667_vm3, %v718_v9  ;;  %v706_v10 = vpop.xlane.xlu0 %705 }
 0x3dc   : > { %2130 = vrcp.f32 %v706_v10 }
 0x3e2   : > { %v2131_v13 = vpop.eup %2130 }
 0x3e3   : > { %1937 = vmatmul.msk.f32.gmra.mxu2 %vm667_vm3, %v719_v12  ;;  %v720_v14 = vmul.f32 %v2131_v13, %v2121_v42 }
 0x3eb   : > { %1938 = vmatmul.msk.f32.gmra.mxu2 %vm667_vm3, %v720_v14  ;;  %v848_v15 = vpop.f32.mrf.mxu3 }
 0x3ec   : > { %v849_v17 = vadd.f32 %v2568_v6, %v848_v15 }
 0x3ee   : > { %v863_v19 = vsel %vm667_vm3, %v849_v17, -inf  ;;  %v1174_v31 = vpop.permute.xlu0 %1173 }
 0x3ef   : > { %864 = vmax.xlane.f32.xlu1 %v863_v19 }
 0x3f3   : > { %v851_v23 = vpop.f32.mrf.mxu3  ;;  %858 = vmax.xlane.f32.xlu2 %v857_v20 }
 0x3f4   : > { %v2645_v24 = vadd.f32 %v2568_v6, %v851_v23 }
 0x3f6   : > { %v866_v25 = vsel %vm667_vm3, %v2645_v24, -inf  ;;  %v1164_v39 = vpop.permute.xlu0 %1163 }
 0x3fb   : > { %867 = vmax.xlane.f32.xlu2 %v866_v25 }
 0x410   : > { %v712_v29 = vpop.xlane.xlu1 %711 }
 0x413   : > { %2070 = vrot.lane.b32.xlu2 %v2531_v50, %s2306_s12 }
 0x41c   : > { %v854_v26 = vpop.f32.mrf.mxu3 }
 0x41d   : > { %v855_v22 = vadd.f32 %v2568_v6, %v854_v26  ;;  %v709_v27 = vpop.xlane.xlu2 %708 }
 0x41e   : > { %2132 = vrcp.f32 %v709_v27 }
 0x41f   : > { %v869_v28 = vsel %vm667_vm3, %v855_v22, -inf  ;;  %2134 = vrcp.f32 %v712_v29 }
 0x420   : > { %870 = vmax.xlane.f32.xlu0 %v869_v28 }
 0x421   : > { %v862_v43 = vpop.xlane.xlu0 %861 }
 0x422   : > { %v873_v51 = vsub.f32 %v2624_v1, %v862_v43 }
 0x424   : > { %v2133_v30 = vpop.eup %2132  ;;  %v879_v54 = vmul.f32 1.442695, %v873_v51 }
 0x425   : > { %v985_v32 = vpop.permute.xlu2 %984  ;;  %v721_v36 = vmul.f32 %v2133_v30, %v2125_v0  ;;  %v2135_v37 = vpop.eup %2134 }
 0x426   : > { %1960 = vmatpush.xpose.msk.msrb.mxu2 %vm614_vm2, %v985_v32  ;;  %v722_v38 = vmul.f32 %v2135_v37, %v2619_v57 }
 0x427   : > { %1939 = vmatmul.msk.f32.gmra.mxu2 %vm667_vm3, %v721_v36 }
 0x428   : > { %v1176_v34 = vpop.permute.xlu1 %1175 }
 0x429   : > { %1974 = vmatpush.xpose.msk.msrb.mxu3 %vm614_vm2, %v1176_v34 }
 0x42d   : > { %1975 = vmatpush.xpose.msk.msrb.mxu3 %vm614_vm2, %v1174_v31  ;;  %v975_v40 = vpop.permute.xlu2 %974 }
 0x42f   : > { %1940 = vmatmul.msk.f32.gmra.mxu2 %vm667_vm3, %v722_v38 }
 0x430   : > { %1976 = vmatmul.msk.f32.vlgmr.msrb.gmra.mxu3 %vm614_vm2, %v1164_v39 }
 0x437   : > { %1961 = vmatmul.msk.f32.vlgmr.msrb.gmra.mxu2 %vm614_vm2, %v975_v40 }
 0x45e   : > { %v2674_v0 = vpop.f32.mrf.mxu2 }
 0x462   : > { %v865_v21 = vpop.xlane.xlu1 %864 }
 0x463   : > { %v874_v41 = vsub.f32 %v849_v17, %v865_v21 }
 0x465   : > { %v881_v42 = vmul.f32 1.442695, %v874_v41 }
 0x466   : > { %v859_v33 = vpop.xlane.xlu2 %858  ;;  %v2678_v1 = vpop.f32.mrf.mxu2 }
 0x467   : > { %2136 = vpow2.f32 %v881_v42  ;;  %v872_v46 = vsub.f32 %v843_v18, %v859_v33 }
 0x469   : > { %v877_v52 = vmul.f32 1.442695, %v872_v46 }
 0x46b   : > { %2138 = vpow2.f32 %v877_v52 }
 0x46c   : > { %2140 = vpow2.f32 %v879_v54 }
 0x46d   : > { %v2662_v53 = vpop.eup %2136 }
 0x46e   : > { %v868_v55 = vpop.xlane.xlu2 %867  ;;  %v893_v56 = vsel %vm667_vm3, %v2662_v53, 0.0  ;;  %v2680_v2 = vpop.f32.mrf.mxu2 }
 0x46f   : > { %894 = vadd.xlane.f32.xlu2 %v893_v56  ;;  %v875_v18 = vsub.f32 %v2645_v24, %v868_v55 }
 0x471   : > { %v2666_v57 = vpop.eup %2138  ;;  %v883_v19 = vmul.f32 1.442695, %v875_v18 }
 0x472   : > { %v887_v58 = vsel %vm667_vm3, %v2666_v57, 0.0  ;;  %v2670_v60 = vpop.eup %2140 }
 0x473   : > { %888 = vadd.xlane.f32.xlu0 %v887_v58  ;;  %v890_v63 = vsel %vm667_vm3, %v2670_v60, 0.0 }
 0x476   : > { %v2071_v59 = vpop.permute.xlu2 %2070 }
 0x477   : > { %v2072_v61 = vunpack.i.l.bf16 %v2071_v59  ;;  %v2073_v62 = vunpack.i.h.bf16 %v2071_v59 }
 0x479   : > { %953 = vmatpush.msrb.mxu0 %v2072_v61 }
 0x47b   : > { %954 = vmatpush.msrb.mxu0 %v2073_v62  ;;  %891 = vadd.xlane.f32.xlu0 %v890_v63 }
 0x48f   : > { %912 = vrot.lane.b32.xlu0 %v2524_v49, %s2306_s12 }
 0x493   : > { %v871_v3 = vpop.xlane.xlu0 %870 }
 0x494   : > { %v876_v4 = vsub.f32 %v855_v22, %v871_v3 }
 0x496   : > { %v885_v7 = vmul.f32 1.442695, %v876_v4 }
 0x498   : > { %2142 = vpow2.f32 %v885_v7 }
 0x499   : > { %2144 = vpow2.f32 %v883_v19 }
 0x49e   : > { %v2687_v11 = vpop.eup %2142 }
 0x49f   : > { %v899_v13 = vsel %vm667_vm3, %v2687_v11, 0.0  ;;  %v2145_v20 = vpop.eup %2144 }
 0x4a0   : > { %v896_v23 = vsel %vm667_vm3, %v2145_v20, 0.0 }
 0x4aa   : > { %v2682_v5 = vpop.f32.mrf.mxu2 }
 0x4b2   : > { %v2684_v8 = vpop.f32.mrf.mxu2 }
 0x4b3   : > { %v1220_v9 = vpop.f32.mrf.mxu3 }
 0x4b4   : > { %v1221_v10 = vadd.f32 %v2568_v6, %v1220_v9 }
 0x4b6   : > { %v1235_v12 = vsel %vm667_vm3, %v1221_v10, -inf }
 0x4b7   : > { %1236 = vmax.xlane.f32.xlu1 %v1235_v12 }
 0x4b9   : > { %900 = vadd.xlane.f32.xlu0 %v899_v13 }
 0x4ba   : > { %v1031_v14 = vpop.f32.mrf.mxu2 }
 0x4bb   : > { %v1032_v15 = vadd.f32 %v2568_v6, %v1031_v14 }
 0x4bd   : > { %v1046_v17 = vsel %vm667_vm3, %v1032_v15, -inf }
 0x4be   : > { %1047 = vmax.xlane.f32.xlu2 %v1046_v17 }
 0x4cd   : > { %2080 = vrot.lane.b32.xlu0 %v2531_v50, %s2307_s13 }
 0x4d0   : > { %2075 = vrot.lane.b32.xlu1 %v2519_v48, %s2306_s12 }
 0x4d5   : > { %1167 = vrot.lane.b32.xlu0 %v2506_v44, %s2304_s25 }
 0x4d6   : > { %976 = vrot.lane.b32.xlu2 %v2513_v35, %s2305_s30 }
 0x4dd   : > { %2095 = vrot.lane.b32.xlu0 %v2519_v48, %s2308_s15 }
 0x4e2   : > { %v895_v22 = vpop.xlane.xlu2 %894 }
 0x4e5   : > { %980 = vrot.lane.b32.xlu0 %v2509_v45, %s2305_s30 }
 0x4e6   : > { %v889_v25 = vpop.xlane.xlu0 %888 }
 0x4ee   : > { %v892_v26 = vpop.xlane.xlu0 %891 }
 0x4fa   : > { %897 = vadd.xlane.f32.xlu1 %v896_v23 }
 0x501   : > { %v913_v29 = vpop.permute.xlu0 %912 }
 0x513   : > { %1165 = vrot.lane.b32.xlu1 %v2513_v35, %s2304_s25 }
 0x51b   : > { %978 = vrot.lane.b32.xlu1 %v2506_v44, %s2305_s30 }
 0x523   : > { %2085 = vrot.lane.b32.xlu1 %v2531_v50, %s2308_s15 }
 0x52a   : > { %v1237_v27 = vpop.xlane.xlu1 %1236 }
 0x52b   : > { %v1250_v24 = vsub.f32 %v1221_v10, %v1237_v27  ;;  %2090 = vrot.lane.b32.xlu1 %v2519_v48, %s2307_s13 }
 0x52c   : > { %v901_v50 = vpop.xlane.xlu0 %900 }
 0x52d   : > { %v1255_v28 = vmul.f32 1.442695, %v1250_v24 }
 0x52f   : > { %2146 = vpow2.f32 %v1255_v28 }
 0x531   : > { %v1048_v30 = vpop.xlane.xlu2 %1047 }
 0x532   : > { %v1061_v31 = vsub.f32 %v1032_v15, %v1048_v30 }
 0x533   : > { %1101 = vrot.lane.b32.xlu1 %v2524_v49, %s2307_s13 }
 0x534   : > { %v1066_v35 = vmul.f32 1.442695, %v1061_v31 }
 0x535   : > { %v2715_v32 = vpop.eup %2146 }
 0x536   : > { %2148 = vpow2.f32 %v1066_v35  ;;  %v1265_v44 = vsel %vm667_vm3, %v2715_v32, 0.0 }
 0x537   : > { %1266 = vadd.xlane.f32.xlu2 %v1265_v44  ;;  %2150 = vrcp.f32 %v889_v25 }
 0x538   : > { %2152 = vrcp.f32 %v892_v26 }
 0x539   : > { %v977_v36 = vpop.permute.xlu2 %976  ;;  %2154 = vrcp.f32 %v895_v22 }
 0x53a   : > { %1962 = vmatmul.msk.f32.gmra.mxu2 %vm614_vm2, %v977_v36 }
 0x53b   : > { %1290 = vrot.lane.b32.xlu1 %v2524_v49, %s2308_s15 }
 0x53c   : > { %v2722_v48 = vpop.eup %2148 }
 0x53d   : > { %v1076_v34 = vsel %vm667_vm3, %v2722_v48, 0.0  ;;  %v2151_v41 = vpop.eup %2150 }
 0x53e   : > { %1077 = vadd.xlane.f32.xlu0 %v1076_v34  ;;  %v907_v42 = vmul.f32 %v2151_v41, %v2666_v57  ;;  %v2153_v43 = vpop.eup %2152 }
 0x53f   : > { %v2081_v37 = vpop.permute.xlu0 %2080  ;;  %v908_v33 = vmul.f32 %v2153_v43, %v2670_v60  ;;  %v2155_v46 = vpop.eup %2154 }
 0x540   : > { %v2082_v38 = vunpack.i.l.bf16 %v2081_v37  ;;  %v2083_v40 = vunpack.i.h.bf16 %v2081_v37  ;;  %v909_v51 = vmul.f32 %v2155_v46, %v2662_v53 }
 0x542   : > { %v2076_v39 = vpop.permute.xlu1 %2075  ;;  %1142 = vmatpush.msrb.mxu1 %v2082_v38 }
 0x543   : > { %1171 = vrot.lane.b32.xlu1 %v2515_v47, %s2304_s25  ;;  %v2077_v21 = vunpack.i.l.bf16 %v2076_v39  ;;  %v2078_v49 = vunpack.i.h.bf16 %v2076_v39 }
 0x544   : > { %1143 = vmatpush.msrb.mxu1 %v2083_v40 }
 0x545   : > { %955 = vmatpush.msrb.mxu0 %v2077_v21 }
 0x547   : > { %956 = vmatpush.msrb.mxu0 %v2078_v49  ;;  %v1168_v57 = vpop.permute.xlu0 %1167 }
 0x549   : > { %957 = vmatpush.msrb.mxu0 %v913_v29 }
 0x54a   : > { %1951 = vmatmul.msk.f32.vlgmr.msrb.gmra.mxu0 %vm667_vm3, %v907_v42 }
 0x54f   : > { %982 = vrot.lane.b32.xlu2 %v2515_v47, %s2305_s30 }
 0x552   : > { %1952 = vmatmul.msk.f32.gmra.mxu0 %vm667_vm3, %v908_v33  ;;  %1169 = vrot.lane.b32.xlu0 %v2509_v45, %s2304_s25  ;;  %v2096_v45 = vpop.permute.xlu0 %2095 }
 0x553   : > { %v2097_v63 = vunpack.i.l.bf16 %v2096_v45  ;;  %v2098_v3 = vunpack.i.h.bf16 %v2096_v45 }
 0x55a   : > { %1953 = vmatmul.msk.f32.gmra.mxu0 %vm667_vm3, %v909_v51  ;;  %v981_v59 = vpop.permute.xlu0 %980 }
 0x56d   : > { %v898_v52 = vpop.xlane.xlu1 %897 }
 0x56e   : > { %2156 = vrcp.f32 %v898_v52 }
 0x56f   : > { %2158 = vrcp.f32 %v901_v50 }
 0x574   : > { %v2157_v54 = vpop.eup %2156 }
 0x575   : > { %v910_v55 = vmul.f32 %v2157_v54, %v2145_v20  ;;  %v2159_v47 = vpop.eup %2158 }
 0x576   : > { %v911_v56 = vmul.f32 %v2159_v47, %v2687_v11 }
 0x577   : > { %1954 = vmatmul.msk.f32.gmra.mxu0 %vm667_vm3, %v910_v55 }
 0x57f   : > { %1955 = vmatmul.msk.f32.gmra.mxu0 %vm667_vm3, %v911_v56 }
 0x585   : > { %v1166_v58 = vpop.permute.xlu1 %1165 }
 0x586   : > { %1977 = vmatmul.msk.f32.gmra.mxu3 %vm614_vm2, %v1166_v58 }
 0x58d   : > { %v979_v53 = vpop.permute.xlu1 %978 }
 0x58e   : > { %1963 = vmatmul.msk.f32.gmra.mxu2 %vm614_vm2, %v979_v53  ;;  %1978 = vmatmul.msk.f32.gmra.mxu3 %vm614_vm2, %v1168_v57  ;;  %v412_v53 = vld [vmem:[%s3046_s4 + $0x18] sm:$0xff] }
 0x58f   : > { %1459 = vmatpush.msra.mxu2 %v412_v53 }
 0x595   : > { %v2086_v60 = vpop.permute.xlu1 %2085 }
 0x596   : > { %v2087_v61 = vunpack.i.l.bf16 %v2086_v60  ;;  %1964 = vmatmul.msk.f32.gmra.mxu2 %vm614_vm2, %v981_v59  ;;  %v2088_v62 = vunpack.i.h.bf16 %v2086_v60  ;;  %v411_v59 = vld [vmem:[%s3046_s4 + $0x10] sm:$0xff] }
 0x597   : > { %1460 = vmatpush.msra.mxu2 %v411_v59 }
 0x598   : > { %1331 = vmatpush.msra.mxu0 %v2087_v61 }
 0x59a   : > { %1332 = vmatpush.msra.mxu0 %v2088_v62 }
 0x59c   : > { %1333 = vmatpush.msra.mxu0 %v2097_v63  ;;  %v409_v63 = vld [vmem:[%s3046_s4] sm:$0xff] }
 0x59d   : > { %v2091_v4 = vpop.permute.xlu1 %2090 }
 0x59e   : > { %1334 = vmatpush.msra.mxu0 %v2098_v3  ;;  %v2092_v7 = vunpack.i.l.bf16 %v2091_v4  ;;  %v2093_v9 = vunpack.i.h.bf16 %v2091_v4 }
 0x5a0   : > { %1144 = vmatpush.msrb.mxu1 %v2092_v7 }
 0x5a2   : > { %1145 = vmatpush.msrb.mxu1 %v2093_v9 }
 0x5a5   : > { %v1102_v10 = vpop.permute.xlu1 %1101 }
 0x5a6   : > { %1146 = vmatpush.msrb.mxu1 %v1102_v10 }
 0x5aa   : > { %v1267_v11 = vpop.xlane.xlu2 %1266 }
 0x5ab   : > { %2160 = vrcp.f32 %v1267_v11 }
 0x5ad   : > { %v1291_v12 = vpop.permute.xlu1 %1290 }
 0x5ae   : > { %1335 = vmatpush.msra.mxu0 %v1291_v12 }
 0x5b1   : > { %v2161_v13 = vpop.eup %2160  ;;  %v1078_v14 = vpop.xlane.xlu0 %1077 }
 0x5b2   : > { %v1285_v15 = vmul.f32 %v2161_v13, %v2715_v32  ;;  %2162 = vrcp.f32 %v1078_v14  ;;  %v983_v17 = vpop.permute.xlu2 %982 }
 0x5b3   : > { %1965 = vmatmul.msk.f32.gmra.mxu2 %vm614_vm2, %v983_v17 }
 0x5b4   : > { %1981 = vmatmul.msk.f32.vlgmr.msra.gmra.mxu0 %vm667_vm3, %v1285_v15 }
 0x5b5   : > { %v1172_v27 = vpop.permute.xlu1 %1171 }
 0x5b8   : > { %v2163_v18 = vpop.eup %2162 }
 0x5b9   : > { %v1096_v19 = vmul.f32 %v2163_v18, %v2722_v48 }
 0x5bb   : > { %1966 = vmatmul.msk.f32.vlgmr.msrb.gmra.mxu1 %vm667_vm3, %v1096_v19 }
 0x5bd   : > { %v1034_v20 = vpop.f32.mrf.mxu2 }
 0x5be   : > { %v1035_v23 = vadd.f32 %v2568_v6, %v1034_v20 }
 0x5c0   : > { %v1049_v25 = vsel %vm667_vm3, %v1035_v23, -inf }
 0x5c1   : > { %1050 = vmax.xlane.f32.xlu0 %v1049_v25 }
 0x5c4   : > { %v1170_v26 = vpop.permute.xlu0 %1169 }
 0x5c5   : > { %1979 = vmatmul.msk.f32.gmra.mxu3 %vm614_vm2, %v1170_v26 }
 0x5c7   : > { %v959_v22 = vpop.f32.mrf.mxu0 }
 0x5c8   : > { %1357 = vrot.lane.b32.xlu2 %v959_v22, %s2309_s16 }
 0x5cd   : > { %1980 = vmatmul.msk.f32.gmra.mxu3 %vm614_vm2, %v1172_v27 }
 0x5cf   : > { %v2757_v30 = vpop.f32.mrf.mxu0 }
 0x5d7   : > { %v2761_v50 = vpop.f32.mrf.mxu0 }
 0x5f4   : > { %v2768_v37 = vpop.f32.mrf.mxu0 }
 0x5fc   : > { %v2770_v38 = vpop.f32.mrf.mxu0 }
 0x609   : > { %v1223_v24 = vpop.f32.mrf.mxu3 }
 0x60a   : > { %v1224_v28 = vadd.f32 %v2568_v6, %v1223_v24 }
 0x60c   : > { %v1238_v29 = vsel %vm667_vm3, %v1224_v28, -inf }
 0x60d   : > { %1239 = vmax.xlane.f32.xlu1 %v1238_v29 }
 0x611   : > { %v1037_v31 = vpop.f32.mrf.mxu2  ;;  %v1226_v35 = vpop.f32.mrf.mxu3 }
 0x612   : > { %v1227_v32 = vadd.f32 %v2568_v6, %v1226_v35  ;;  %v1038_v56 = vadd.f32 %v2568_v6, %v1037_v31 }
 0x614   : > { %v1241_v44 = vsel %vm667_vm3, %v1227_v32, -inf  ;;  %v1052_v57 = vsel %vm667_vm3, %v1038_v56, -inf }
 0x615   : > { %1242 = vmax.xlane.f32.xlu1 %v1241_v44 }
 0x619   : > { %v1040_v36 = vpop.f32.mrf.mxu2 }
 0x61a   : > { %v2764_v48 = vadd.f32 %v2568_v6, %v1040_v36 }
 0x61c   : > { %v1055_v34 = vsel %vm667_vm3, %v2764_v48, -inf }
 0x61d   : > { %1056 = vmax.xlane.f32.xlu1 %v1055_v34 }
 0x622   : > { %v1358_v13 = vpop.permute.xlu2 %1357 }
 0x623   : > { %v1412_v15 = vsel %vm614_vm2, %v2674_v0, %v1358_v13 }
 0x631   : > { %v1337_v39 = vpop.f32.mrf.mxu0 }
 0x632   : > { %1397 = vrot.lane.b32.xlu0 %v1337_v39, %s3054_s14  ;;  %s3065_s14 = smov 16  }
 0x634   : > { %v1051_v51 = vpop.xlane.xlu0 %1050 }
 0x635   : > { %v1062_v54 = vsub.f32 %v1035_v23, %v1051_v51 }
 0x636   : > { %v1043_v40 = vpop.f32.mrf.mxu2 }
 0x637   : > { %v2774_v21 = vadd.f32 %v2568_v6, %v1043_v40  ;;  %v1068_v47 = vmul.f32 1.442695, %v1062_v54 }
 0x638   : > { %v1148_v41 = vpop.f32.mrf.mxu1 }
 0x639   : > { %1377 = vrot.lane.b32.xlu2 %v1148_v41, %s3056_s29  ;;  %v1058_v49 = vsel %vm667_vm3, %v2774_v21, -inf  ;;  %2164 = vpow2.f32 %v1068_v47  ;;  %s3066_s29 = smov 24  }
 0x63a   : > { %1059 = vmax.xlane.f32.xlu1 %v1058_v49 }
 0x63f   : > { %v2785_v58 = vpop.eup %2164 }
 0x640   : > { %v1079_v45 = vsel %vm667_vm3, %v2785_v58, 0.0 }
 0x648   : > { %v1229_v42 = vpop.f32.mrf.mxu3 }
 0x649   : > { %v1230_v52 = vadd.f32 %v2568_v6, %v1229_v42 }
 0x64b   : > { %v1244_v55 = vsel %vm667_vm3, %v1230_v52, -inf }
 0x650   : > { %v1232_v43 = vpop.f32.mrf.mxu3 }
 0x651   : > { %v1233_v33 = vadd.f32 %v2568_v6, %v1232_v43  ;;  %v410_v6 = vld [vmem:[%s3046_s4 + $0x8] sm:$0xff] }
 0x652   : > { %1461 = vmatpush.msra.mxu2 %v410_v6 }
 0x653   : > { %v1247_v46 = vsel %vm667_vm3, %v1233_v33, -inf }
 0x654   : > { %1248 = vmax.xlane.f32.xlu1 %v1247_v46  ;;  %1462 = vmatpush.msra.mxu2 %v409_v63 }
 0x65c   : > { %1245 = vmax.xlane.f32.xlu0 %v1244_v55 }
 0x662   : > { %1053 = vmax.xlane.f32.xlu2 %v1052_v57 }
 0x66a   : > { %1080 = vadd.xlane.f32.xlu2 %v1079_v45 }
 0x680   : > { %v1240_v60 = vpop.xlane.xlu1 %1239 }
 0x681   : > { %v1251_v61 = vsub.f32 %v1224_v28, %v1240_v60 }
 0x683   : > { %v1257_v62 = vmul.f32 1.442695, %v1251_v61 }
 0x685   : > { %2166 = vpow2.f32 %v1257_v62 }
 0x688   : > { %v1243_v3 = vpop.xlane.xlu1 %1242 }
 0x689   : > { %v1252_v4 = vsub.f32 %v1227_v32, %v1243_v3 }
 0x68b   : > { %v2167_v7 = vpop.eup %2166  ;;  %v1259_v9 = vmul.f32 1.442695, %v1252_v4 }
 0x68c   : > { %v1268_v10 = vsel %vm667_vm3, %v2167_v7, 0.0 }
 0x68d   : > { %2168 = vpow2.f32 %v1259_v9  ;;  %1269 = vadd.xlane.f32.xlu1 %v1268_v10 }
 0x690   : > { %v1057_v20 = vpop.xlane.xlu1 %1056 }
 0x691   : > { %v1064_v0 = vsub.f32 %v2764_v48, %v1057_v20 }
 0x693   : > { %v2169_v11 = vpop.eup %2168  ;;  %v1378_v14 = vpop.permute.xlu2 %1377  ;;  %v1072_v36 = vmul.f32 1.442695, %v1064_v0 }
 0x694   : > { %v1271_v12 = vsel %vm667_vm3, %v2169_v11, 0.0  ;;  %v1418_v17 = vsel %vm1417_vm4, %v1412_v15, %v1378_v14  ;;  %v2831_v14 = vld [vmem:[%s3047_s5] ss:$0 sm:$0xff] }
 0x695   : > { %1272 = vadd.xlane.f32.xlu1 %v1271_v12 }
 0x6a4   : > { %v1398_v18 = vpop.permute.xlu0 %1397 }
 0x6a5   : > { %v1424_v19 = vsel %vm1423_vm5, %v1418_v17, %v1398_v18  ;;  %v2228_v18 = vld [vmem:[%s2432_s22] sm:$0xff] }
 0x6a6   : > { %1986 = vmatmul.msk.f32.vlgmr.msra.gmra.mxu2 %vm428_vm0, %v1424_v19 }
 0x6ad   : > { %v1060_v23 = vpop.xlane.xlu1 %1059 }
 0x6ae   : > { %v1065_v41 = vsub.f32 %v2774_v21, %v1060_v23 }
 0x6b0   : > { %v1074_v43 = vmul.f32 1.442695, %v1065_v41 }
 0x6c7   : > { %v1249_v25 = vpop.xlane.xlu1 %1248 }
 0x6c8   : > { %v1254_v27 = vsub.f32 %v1233_v33, %v1249_v25 }
 0x6ca   : > { %v1263_v28 = vmul.f32 1.442695, %v1254_v27 }
 0x6cf   : > { %v1246_v26 = vpop.xlane.xlu0 %1245 }
 0x6d0   : > { %v1253_v22 = vsub.f32 %v1230_v52, %v1246_v26 }
 0x6d2   : > { %v1261_v24 = vmul.f32 1.442695, %v1253_v22 }
 0x6d4   : > { %2170 = vpow2.f32 %v1261_v24 }
 0x6d5   : > { %v1054_v29 = vpop.xlane.xlu2 %1053  ;;  %2172 = vpow2.f32 %v1263_v28 }
 0x6d6   : > { %v1063_v31 = vsub.f32 %v1038_v56, %v1054_v29 }
 0x6d8   : > { %v1070_v35 = vmul.f32 1.442695, %v1063_v31 }
 0x6da   : > { %v2171_v32 = vpop.eup %2170  ;;  %2174 = vpow2.f32 %v1070_v35 }
 0x6db   : > { %v1274_v44 = vsel %vm667_vm3, %v2171_v32, 0.0  ;;  %v2173_v39 = vpop.eup %2172 }
 0x6dc   : > { %1275 = vadd.xlane.f32.xlu1 %v1274_v44  ;;  %v1277_v48 = vsel %vm667_vm3, %v2173_v39, 0.0 }
 0x6dd   : > { %v1081_v34 = vpop.xlane.xlu2 %1080 }
 0x6de   : > { %2176 = vrcp.f32 %v1081_v34 }
 0x6df   : > { %2178 = vpow2.f32 %v1072_v36 }
 0x6e0   : > { %v2175_v40 = vpop.eup %2174  ;;  %2180 = vpow2.f32 %v1074_v43 }
 0x6e1   : > { %v1082_v49 = vsel %vm667_vm3, %v2175_v40, 0.0 }
 0x6e2   : > { %1083 = vadd.xlane.f32.xlu2 %v1082_v49 }
 0x6e4   : > { %v2177_v42 = vpop.eup %2176  ;;  %1278 = vadd.xlane.f32.xlu1 %v1277_v48 }
 0x6e5   : > { %v1097_v33 = vmul.f32 %v2177_v42, %v2785_v58  ;;  %v2179_v46 = vpop.eup %2178 }
 0x6e6   : > { %v1085_v51 = vsel %vm667_vm3, %v2179_v46, 0.0  ;;  %v2181_v52 = vpop.eup %2180 }
 0x6e7   : > { %1967 = vmatmul.msk.f32.gmra.mxu1 %vm667_vm3, %v1097_v33  ;;  %v1088_v21 = vsel %vm667_vm3, %v2181_v52, 0.0 }
 0x6ea   : > { %1086 = vadd.xlane.f32.xlu2 %v1085_v51 }
 0x6f2   : > { %1089 = vadd.xlane.f32.xlu2 %v1088_v21 }
 0x700   : > { %v1270_v54 = vpop.xlane.xlu1 %1269 }
 0x701   : > { %2182 = vrcp.f32 %v1270_v54 }
 0x707   : > { %v2183_v55 = vpop.eup %2182 }
 0x708   : > { %v1273_v47 = vpop.xlane.xlu1 %1272  ;;  %v1286_v56 = vmul.f32 %v2183_v55, %v2167_v7 }
 0x709   : > { %2184 = vrcp.f32 %v1273_v47 }
 0x70a   : > { %1982 = vmatmul.msk.f32.gmra.mxu0 %vm667_vm3, %v1286_v56  ;;  %1359 = vrot.lane.b32.xlu2 %v2757_v30, %s2309_s16 }
 0x70f   : > { %v2185_v57 = vpop.eup %2184 }
 0x710   : > { %v1287_v58 = vmul.f32 %v2185_v57, %v2169_v11 }
 0x712   : > { %1983 = vmatmul.msk.f32.gmra.mxu0 %vm667_vm3, %v1287_v58  ;;  %v2229_v58 = vld [vmem:[%s2432_s22 + $0x8] sm:$0xff] }
 0x729   : > { %v1464_v15 = vpop.f32.mrf.mxu2 }
 0x72a   : > { %v1465_v17 = vadd.f32 %v2831_v14, %v1464_v15  ;;  %v2230_v15 = vld [vmem:[%s2432_s22 + $0x10] sm:$0xff] }
 0x72c   : > { %v2835_v19 = vadd.f32 %v2228_v18, %v1465_v17 }
 0x72e   : > { %v1484_v20 = vsel %vm428_vm0, %v2835_v19, 0.0 }
 0x74f   : > { %v1276_v45 = vpop.xlane.xlu1 %1275 }
 0x750   : > { %2186 = vrcp.f32 %v1276_v45 }
 0x755   : > { %v1084_v53 = vpop.xlane.xlu2 %1083 }
 0x756   : > { %v2187_v59 = vpop.eup %2186  ;;  %2188 = vrcp.f32 %v1084_v53 }
 0x757   : > { %v1279_v6 = vpop.xlane.xlu1 %1278  ;;  %v1288_v60 = vmul.f32 %v2187_v59, %v2171_v32  ;;  %v415_v59 = vld [vmem:[%s3048_s6 + $0x8] sm:$0xff] }
 0x758   : > { %2190 = vrcp.f32 %v1279_v6  ;;  %v414_v6 = vld [vmem:[%s3048_s6] sm:$0xff] }
 0x759   : > { %1984 = vmatmul.msk.f32.gmra.mxu0 %vm667_vm3, %v1288_v60 }
 0x75c   : > { %v2189_v61 = vpop.eup %2188 }
 0x75d   : > { %v1087_v62 = vpop.xlane.xlu2 %1086  ;;  %v1098_v63 = vmul.f32 %v2189_v61, %v2175_v40 }
 0x75e   : > { %v2191_v3 = vpop.eup %2190  ;;  %2192 = vrcp.f32 %v1087_v62 }
 0x75f   : > { %1968 = vmatmul.msk.f32.gmra.mxu1 %vm667_vm3, %v1098_v63  ;;  %v1289_v30 = vmul.f32 %v2191_v3, %v2173_v39 }
 0x761   : > { %1985 = vmatmul.msk.f32.gmra.mxu0 %vm667_vm3, %v1289_v30 }
 0x764   : > { %v2193_v4 = vpop.eup %2192  ;;  %v1151_v7 = vpop.f32.mrf.mxu1 }
 0x765   : > { %1379 = vrot.lane.b32.xlu1 %v1151_v7, %s3065_s14  ;;  %v1090_v9 = vpop.xlane.xlu2 %1089  ;;  %v1099_v10 = vmul.f32 %v2193_v4, %v2179_v46 }
 0x766   : > { %2194 = vrcp.f32 %v1090_v9 }
 0x767   : > { %1969 = vmatmul.msk.f32.gmra.mxu1 %vm667_vm3, %v1099_v10 }
 0x76c   : > { %v2195_v11 = vpop.eup %2194 }
 0x76d   : > { %v1100_v12 = vmul.f32 %v2195_v11, %v2181_v52  ;;  %v1360_v24 = vpop.permute.xlu2 %1359  ;;  %v417_v52 = vld [vmem:[%s3048_s6 + $0x18] sm:$0xff] }
 0x76e   : > { %v1413_v29 = vsel %vm614_vm2, %v2678_v1, %v1360_v24  ;;  %1624 = vmatpush.msra.mxu1 %v417_v52  ;;  %v2232_v24 = vld [vmem:[%s2432_s22 + $0x20] sm:$0xff] }
 0x76f   : > { %1970 = vmatmul.msk.f32.gmra.mxu1 %vm667_vm3, %v1100_v12 }
 0x787   : > { %v1340_v13 = vpop.f32.mrf.mxu0 }
 0x788   : > { %1399 = vrot.lane.b32.xlu0 %v1340_v13, %s3066_s29 }
 0x78f   : > { %v1343_v23 = vpop.f32.mrf.mxu0 }
 0x7b2   : > { %1485 = vadd.xlane.f32.xlu0 %v1484_v20 }
 0x7c6   : > { %1361 = vrot.lane.b32.xlu0 %v2761_v50, %s2309_s16 }
 0x7ce   : > { %1401 = vrot.lane.b32.xlu0 %v1343_v23, %s3066_s29 }
 0x7d6   : > { %v1346_v22 = vpop.f32.mrf.mxu0 }
 0x7d7   : > { %v1380_v28 = vpop.permute.xlu1 %1379 }
 0x7dc   : > { %v1154_v25 = vpop.f32.mrf.mxu1 }
 0x7dd   : > { %1381 = vrot.lane.b32.xlu1 %v1154_v25, %s3065_s14  ;;  %v2231_v25 = vld [vmem:[%s2432_s22 + $0x18] sm:$0xff] }
 0x7de   : > { %v1349_v27 = vpop.f32.mrf.mxu0 }
 0x7e4   : > { %v1157_v26 = vpop.f32.mrf.mxu1 }
 0x7e5   : > { %1363 = vrot.lane.b32.xlu1 %v2768_v37, %s2309_s16  ;;  %1383 = vrot.lane.b32.xlu0 %v1157_v26, %s3065_s14  ;;  %v1419_v37 = vsel %vm1417_vm4, %v1413_v29, %v1380_v28 }
 0x7ec   : > { %v1160_v50 = vpop.f32.mrf.mxu1 }
 0x7ed   : > { %1403 = vrot.lane.b32.xlu1 %v1346_v22, %s3066_s29  ;;  %1365 = vrot.lane.b32.xlu0 %v2770_v38, %s2309_s16  ;;  %s1848_s16 = scalar_lea.hbm %s3053_s11, %s2393_s21  ;;  %s2253_s21 = scalar_lea.hbm %s3053_s11, 2 }
 0x7ee   : > { %s1852_s12 = sshll.u32 %s1848_s16, 4  ;;  %s1853_s12 = int_to_ptr.hbm [resolvable:$true] %s1852_s12 }
 0x7ef   : > { %s2247_s15 = sshra.s32 %s1853_s12, 4  ;;  %s2248_s15 = int_to_ptr.hbm [resolvable:$true] %s2247_s15 }
 0x7f0   : > { %p2254_p0 = scmp.lt.s32.totalorder %s2248_s15, %s3053_s11 }
 0x7f5   : > { %1405 = vrot.lane.b32.xlu0 %v1349_v27, %s3066_s29  ;;  %1385 = vrot.lane.b32.xlu1 %v1160_v50, %s3065_s14  ;;  %s388_s29 = sand.u32 1, %s2287_s18   ;;  %s2249_s14 = scalar_lea.hbm %s2248_s15, 1 }
 0x7f6   : > { %s389_s22 = scalar_lea.vmem [#allocation2], %s388_s29  ;;  %s1840_s13 = scalar_lea.sflag [#allocation3], %s388_s29 }
 0x7f7   : > { %s1850_s30 = sshll.u32 %s389_s22, 4  ;;  %p2250_p11 = scmp.ne.s32.totalorder %s2248_s15, %s2249_s14  ;;  %s1851_s30 = int_to_ptr.vmem [resolvable:$true] %s1850_s30 }
 0x7f8   : > { %p2255_p1 = scmp.lt.s32.totalorder %s2253_s21, %s2249_s14 }
 0x7f9   : > { %p2251_p12 = pnand %p2250_p11, %p2410_p5 }
 0x7fa   : > { %v1400_v31 = vpop.permute.xlu0 %1399  ;;  %p2256_p2 = por %p2255_p1, %p2254_p0 }
 0x7fb   : > { %v1425_v0 = vsel %vm1423_vm5, %v1419_v37, %v1400_v31  ;;  %p2252_p13 = pneg %p2251_p12 }
 0x7fc   : > { %1987 = vmatmul.msk.f32.gmra.mxu2 %vm428_vm0, %v1425_v0 }
 0x7fd   : > { %p2257_p3 = pnand %p2256_p2, %p2252_p13 }
 0x825   : > { %v1486_v35 = vpop.xlane.xlu0 %1485 }
 0x826   : > { %v1499_v38 = vmul.f32 %v1486_v35, %v2444_v16 }
 0x828   : > { %v1504_v32 = vsub.f32 %v2835_v19, %v1499_v38 }
 0x82a   : > { %v1509_v44 = vmul.f32 %v1504_v32, %v1504_v32 }
 0x82c   : > { %v1514_v36 = vsel %vm428_vm0, %v1509_v44, 0.0  ;;  %v424_v44 = vld [vmem:[%s3050_s8 + $0x28] sm:$0xff] }
 0x82d   : > { %1515 = vadd.xlane.f32.xlu2 %v1514_v36  ;;  %v423_v36 = vld [vmem:[%s3050_s8 + $0x20] sm:$0xff] }
 0x838   : > { %v1362_v34 = vpop.permute.xlu0 %1361 }
 0x839   : > { %v1414_v1 = vsel %vm614_vm2, %v2680_v2, %v1362_v34  ;;  %v422_v34 = vld [vmem:[%s3050_s8 + $0x18] sm:$0xff] }
 0x840   : > { %v1402_v39 = vpop.permute.xlu0 %1401 }
 0x84f   : > { %v1382_v40 = vpop.permute.xlu1 %1381 }
 0x850   : > { %v1420_v41 = vsel %vm1417_vm4, %v1414_v1, %v1382_v40  ;;  %v2930_v1 = vld [vmem:[%s3049_s7] ss:$0 sm:$0xff]  ;;  %v420_v40 = vld [vmem:[%s3050_s8 + $0x8] sm:$0xff] }
 0x851   : > { %v1426_v49 = vsel %vm1423_vm5, %v1420_v41, %v1402_v39  ;;  %v421_v39 = vld [vmem:[%s3050_s8 + $0x10] sm:$0xff] }
 0x852   : > { %1988 = vmatmul.msk.f32.gmra.mxu2 %vm428_vm0, %v1426_v49 }
 0x857   : > { %v1364_v48 = vpop.permute.xlu1 %1363  ;;  %v1384_v42 = vpop.permute.xlu0 %1383 }
 0x858   : > { %v1415_v43 = vsel %vm614_vm2, %v2682_v5, %v1364_v48  ;;  %v419_v48 = vld [vmem:[%s3050_s8] sm:$0xff] }
 0x859   : > { %v1421_v33 = vsel %vm1417_vm4, %v1415_v43, %v1384_v42 }
 0x85f   : > { %v1404_v46 = vpop.permute.xlu1 %1403  ;;  %v1366_v51 = vpop.permute.xlu0 %1365 }
 0x860   : > { %v1427_v2 = vsel %vm1423_vm5, %v1421_v33, %v1404_v46  ;;  %v1416_v21 = vsel %vm614_vm2, %v2684_v8, %v1366_v51  ;;  %v416_v8 = vld [vmem:[%s3048_s6 + $0x10] sm:$0xff] }
 0x861   : > { %1989 = vmatmul.msk.f32.gmra.mxu2 %vm428_vm0, %v1427_v2  ;;  %1625 = vmatpush.msra.mxu1 %v416_v8 }
 0x863   : > { %1626 = vmatpush.msra.mxu1 %v415_v59 }
 0x865   : > { %1627 = vmatpush.msra.mxu1 %v414_v6 }
 0x867   : > { %v1406_v54 = vpop.permute.xlu0 %1405  ;;  %v1386_v55 = vpop.permute.xlu1 %1385 }
 0x868   : > { %v1422_v5 = vsel %vm1417_vm4, %v1416_v21, %v1386_v55 }
 0x869   : > { %v1428_v47 = vsel %vm1423_vm5, %v1422_v5, %v1406_v54  ;;  %vm1792_vm5 = vcmask 253952  }
 0x86a   : > { %1990 = vmatmul.msk.f32.gmra.mxu2 %vm428_vm0, %v1428_v47 }
 0x87f   : > { %v1467_v56 = vpop.f32.mrf.mxu2 }
 0x880   : > { %v1468_v57 = vadd.f32 %v2831_v14, %v1467_v56 }
 0x882   : > { %v1480_v45 = vadd.f32 %v2229_v58, %v1468_v57 }
 0x884   : > { %v1487_v53 = vsel %vm428_vm0, %v1480_v45, 0.0 }
 0x885   : > { %1488 = vadd.xlane.f32.xlu1 %v1487_v53 }
 0x8a0   : > { %v1516_v60 = vpop.xlane.xlu2 %1515 }
 0x8a1   : > { %v1529_v61 = vmul.f32 %v1516_v60, %v2444_v16 }
 0x8a3   : > { %v1534_v62 = vadd.f32 1e-05, %v1529_v61 }
 0x8a5   : > { %2196 = vrsqrt.f32 %v1534_v62  ;;  %vm1545_vm7 = vweird.f32 %v1534_v62 }
 0x8ab   : > { %v2197_v63 = vpop.eup %2196 }
 0x8ac   : > { %v1540_v3 = vmul.f32 %v2197_v63, %v1534_v62  ;;  %vm1546_vm6 = vweird.f32 %v2197_v63 }
 0x8ad   : > { %vm1547_vm8 = vmor %vm1545_vm7, %vm1546_vm6 }
 0x8ae   : > { %v1541_v30 = vmul.f32 %v2197_v63, %v1540_v3 }
 0x8b0   : > { %v1542_v4 = vmul.f32 0.5, %v1541_v30 }
 0x8b2   : > { %v1543_v7 = vsub.f32 1.5, %v1542_v4 }
 0x8b4   : > { %v1544_v9 = vmul.f32 %v2197_v63, %v1543_v7 }
 0x8b6   : > { %v1548_v10 = vsel %vm1547_vm8, %v2197_v63, %v1544_v9 }
 0x8b7   : > { %v1589_v11 = vmul.f32 %v1548_v10, %v1504_v32  ;;  %v425_v32 = vld [vmem:[%s3050_s8 + $0x30] sm:$0xff] }
 0x8b9   : > { %1991 = vmatmul.msk.f32.vlgmr.msra.gmra.mxu1 %vm428_vm0, %v1589_v11 }
 0x8d5   : > { %v1470_v12 = vpop.f32.mrf.mxu2 }
 0x8d6   : > { %v1471_v13 = vadd.f32 %v2831_v14, %v1470_v12 }
 0x8d8   : > { %v1481_v17 = vadd.f32 %v2230_v15, %v1471_v13 }
 0x8da   : > { %v1490_v18 = vsel %vm428_vm0, %v1481_v17, 0.0 }
 0x8db   : > { %1491 = vadd.xlane.f32.xlu2 %v1490_v18 }
 0x8e4   : > { %v1473_v20 = vpop.f32.mrf.mxu2 }
 0x8e5   : > { %v1474_v23 = vadd.f32 %v2831_v14, %v1473_v20 }
 0x8e7   : > { %v2896_v26 = vadd.f32 %v2231_v25, %v1474_v23 }
 0x8e9   : > { %v1493_v22 = vsel %vm428_vm0, %v2896_v26, 0.0 }
 0x8ea   : > { %1494 = vadd.xlane.f32.xlu0 %v1493_v22 }
 0x8ed   : > { %v1476_v27 = vpop.f32.mrf.mxu2 }
 0x8ee   : > { %v1477_v50 = vadd.f32 %v2831_v14, %v1476_v27  ;;  %v426_v14 = vld [vmem:[%s3050_s8 + $0x38] sm:$0xff] }
 0x8ef   : > { %1763 = vmatpush.msra.mxu3 %v426_v14 }
 0x8f0   : > { %v2902_v28 = vadd.f32 %v2232_v24, %v1477_v50 }
 0x8f1   : > { %1764 = vmatpush.msra.mxu3 %v425_v32 }
 0x8f2   : > { %v1496_v29 = vsel %vm428_vm0, %v2902_v28, 0.0 }
 0x8f3   : > { %1497 = vadd.xlane.f32.xlu2 %v1496_v29  ;;  %1765 = vmatpush.msra.mxu3 %v424_v44 }
 0x8f5   : > { %1766 = vmatpush.msra.mxu3 %v423_v36 }
 0x8f7   : > { %1767 = vmatpush.msra.mxu3 %v422_v34 }
 0x8f8   : > { %v1489_v37 = vpop.xlane.xlu1 %1488 }
 0x8f9   : > { %v1500_v31 = vmul.f32 %v1489_v37, %v2444_v16  ;;  %1768 = vmatpush.msra.mxu3 %v421_v39 }
 0x8fb   : > { %v2907_v0 = vsub.f32 %v1480_v45, %v1500_v31  ;;  %1769 = vmatpush.msra.mxu3 %v420_v40 }
 0x8fd   : > { %v1510_v35 = vmul.f32 %v2907_v0, %v2907_v0  ;;  %1770 = vmatpush.msra.mxu3 %v419_v48 }
 0x8ff   : > { %v1517_v38 = vsel %vm428_vm0, %v1510_v35, 0.0 }
 0x900   : > { %1518 = vadd.xlane.f32.xlu2 %v1517_v38 }
 0x936   : > { %v1629_v41 = vpop.f32.mrf.mxu1 }
 0x937   : > { %v1630_v49 = vadd.f32 %v2930_v1, %v1629_v41 }
 0x939   : > { %v1644_v42 = vsub.f32 0.0, %v1630_v49 }
 0x93b   : > { %v1649_v43 = vmul.f32 1.442695, %v1644_v42 }
 0x93d   : > { %2198 = vpow2.f32 %v1649_v43 }
 0x943   : > { %v2199_v33 = vpop.eup %2198 }
 0x944   : > { %v1659_v46 = vadd.f32 1.0, %v2199_v33 }
 0x946   : > { %2200 = vrcp.f32 %v1659_v46  ;;  %v1675_v55 = vand.u32 2147483648, %v1659_v46  ;;  %v1673_v47 = vand.u32 2147483647, %v1659_v46  ;;  %vm1669_vm10 = vweird.f32 %v1659_v46 }
 0x948   : > { %v1676_v45 = vor.u32 1.1754944e-38, %v1675_v55  ;;  %vm1674_vm12 = vcmp.eq.f32.partialorder %v1673_v47, 8.507059e+37 }
 0x94c   : > { %v2201_v51 = vpop.eup %2200 }
 0x94d   : > { %v1665_v2 = vmul.f32 %v2201_v51, %v1659_v46  ;;  %vm1670_vm9 = vweird.f32 %v2201_v51 }
 0x94e   : > { %v1492_v52 = vpop.xlane.xlu2 %1491  ;;  %vm1671_vm11 = vmor %vm1669_vm10, %vm1670_vm9 }
 0x94f   : > { %v1666_v21 = vsub.f32 1.0, %v1665_v2  ;;  %v1501_v54 = vmul.f32 %v1492_v52, %v2444_v16 }
 0x951   : > { %v1667_v5 = vmul.f32 %v2201_v51, %v1666_v21  ;;  %v2943_v56 = vsub.f32 %v1481_v17, %v1501_v54 }
 0x953   : > { %v1668_v57 = vadd.f32 %v2201_v51, %v1667_v5  ;;  %v1511_v58 = vmul.f32 %v2943_v56, %v2943_v56 }
 0x955   : > { %v1672_v53 = vsel %vm1671_vm11, %v2201_v51, %v1668_v57  ;;  %v1520_v8 = vsel %vm428_vm0, %v1511_v58, 0.0 }
 0x956   : > { %v1677_v59 = vsel %vm1674_vm12, %v1676_v45, %v1672_v53  ;;  %1521 = vadd.xlane.f32.xlu2 %v1520_v8 }
 0x957   : > { %v1678_v6 = vmul.f32 %v1677_v59, %v1630_v49 }
 0x959   : > { %1996 = vmatmul.msk.f32.vlgmr.msra.gmra.mxu3 %vm1739_vm13, %v1678_v6 }
 0x95d   : > { %v1495_v60 = vpop.xlane.xlu0 %1494 }
 0x95e   : > { %v1502_v61 = vmul.f32 %v1495_v60, %v2444_v16 }
 0x960   : > { %v2951_v62 = vsub.f32 %v2896_v26, %v1502_v61 }
 0x962   : > { %v1512_v63 = vmul.f32 %v2951_v62, %v2951_v62 }
 0x964   : > { %v1523_v3 = vsel %vm428_vm0, %v1512_v63, 0.0 }
 0x965   : > { %1524 = vadd.xlane.f32.xlu2 %v1523_v3 }
 0x966   : > { %v1498_v30 = vpop.xlane.xlu2 %1497 }
 0x967   : > { %v1503_v4 = vmul.f32 %v1498_v30, %v2444_v16 }
 0x969   : > { %v2958_v7 = vsub.f32 %v2902_v28, %v1503_v4 }
 0x96b   : > { %v1513_v9 = vmul.f32 %v2958_v7, %v2958_v7 }
 0x96d   : > { %v1526_v10 = vsel %vm428_vm0, %v1513_v9, 0.0 }
 0x96e   : > { %1527 = vadd.xlane.f32.xlu1 %v1526_v10 }
 0x973   : > { %v1519_v11 = vpop.xlane.xlu2 %1518 }
 0x974   : > { %v1530_v12 = vmul.f32 %v1519_v11, %v2444_v16 }
 0x976   : > { %v1535_v13 = vadd.f32 1e-05, %v1530_v12 }
 0x978   : > { %2202 = vrsqrt.f32 %v1535_v13  ;;  %vm1555_vm15 = vweird.f32 %v1535_v13 }
 0x97e   : > { %v2203_v15 = vpop.eup %2202 }
 0x97f   : > { %v1550_v17 = vmul.f32 %v2203_v15, %v1535_v13  ;;  %vm1556_vm14 = vweird.f32 %v2203_v15 }
 0x980   : > { %vm1557_vm1 = vmor %vm1555_vm15, %vm1556_vm14 }
 0x981   : > { %v1551_v18 = vmul.f32 %v2203_v15, %v1550_v17 }
 0x983   : > { %v1552_v20 = vmul.f32 0.5, %v1551_v18 }
 0x985   : > { %v1553_v23 = vsub.f32 1.5, %v1552_v20 }
 0x987   : > { %v1554_v25 = vmul.f32 %v2203_v15, %v1553_v23 }
 0x989   : > { %v1558_v26 = vsel %vm1557_vm1, %v2203_v15, %v1554_v25 }
 0x98a   : > { %v1590_v22 = vmul.f32 %v1558_v26, %v2907_v0  ;;  %v2103_v0 = vld [vmem:[%s3051_s9] ss:$0 sm:$0xff] }
 0x98c   : > { %1992 = vmatmul.msk.f32.gmra.mxu1 %vm428_vm0, %v1590_v22 }
 0x9c9   : > { %v1522_v27 = vpop.xlane.xlu2 %1521 }
 0x9ca   : > { %v1531_v50 = vmul.f32 %v1522_v27, %v2444_v16 }
 0x9cc   : > { %v1536_v24 = vadd.f32 1e-05, %v1531_v50 }
 0x9ce   : > { %2204 = vrsqrt.f32 %v1536_v24  ;;  %vm1565_vm3 = vweird.f32 %v1536_v24 }
 0x9d4   : > { %v2205_v28 = vpop.eup %2204 }
 0x9d5   : > { %v1560_v29 = vmul.f32 %v2205_v28, %v1536_v24  ;;  %vm1566_vm2 = vweird.f32 %v2205_v28 }
 0x9d6   : > { %vm1567_vm4 = vmor %vm1565_vm3, %vm1566_vm2 }
 0x9d7   : > { %v1561_v37 = vmul.f32 %v2205_v28, %v1560_v29 }
 0x9d8   : > { %v1525_v31 = vpop.xlane.xlu2 %1524 }
 0x9d9   : > { %v1562_v35 = vmul.f32 0.5, %v1561_v37  ;;  %v1532_v38 = vmul.f32 %v1525_v31, %v2444_v16 }
 0x9db   : > { %v1563_v14 = vsub.f32 1.5, %v1562_v35  ;;  %v1537_v32 = vadd.f32 1e-05, %v1532_v38 }
 0x9dc   : > { %v1772_v44 = vpop.f32.mrf.mxu3 }
 0x9dd   : > { %2206 = vrsqrt.f32 %v1537_v32  ;;  %v1783_v36 = vadd.f32 %v1772_v44, %v2835_v19  ;;  %v1564_v34 = vmul.f32 %v2205_v28, %v1563_v14  ;;  %vm1575_vm7 = vweird.f32 %v1537_v32 }
 0x9df   : > { %v1787_v39 = vadd.f32 %v2103_v0, %v1783_v36  ;;  %v1568_v40 = vsel %vm1567_vm4, %v2205_v28, %v1564_v34 }
 0x9e0   : > { %v1591_v41 = vmul.f32 %v1568_v40, %v2943_v56 }
 0x9e1   : > { %v1528_v49 = vpop.xlane.xlu1 %1527  ;;  %v1793_v48 = vsel %vm1792_vm5, %v1787_v39, 0.0 }
 0x9e2   : > { %v1533_v42 = vmul.f32 %v1528_v49, %v2444_v16  ;;  %1794 = vadd.xlane.f32.xlu2 %v1793_v48  ;;  %1993 = vmatmul.msk.f32.gmra.mxu1 %vm428_vm0, %v1591_v41 }
 0x9e3   : > { %v2207_v43 = vpop.eup %2206 }
 0x9e4   : > { %v1570_v33 = vmul.f32 %v2207_v43, %v1537_v32  ;;  %v1538_v46 = vadd.f32 1e-05, %v1533_v42  ;;  %vm1576_vm6 = vweird.f32 %v2207_v43 }
 0x9e5   : > { %vm1577_vm8 = vmor %vm1575_vm7, %vm1576_vm6 }
 0x9e6   : > { %v1571_v51 = vmul.f32 %v2207_v43, %v1570_v33  ;;  %2208 = vrsqrt.f32 %v1538_v46  ;;  %vm1585_vm10 = vweird.f32 %v1538_v46 }
 0x9e8   : > { %v1572_v19 = vmul.f32 0.5, %v1571_v51 }
 0x9ea   : > { %v1573_v2 = vsub.f32 1.5, %v1572_v19 }
 0x9ec   : > { %v2209_v52 = vpop.eup %2208  ;;  %v1574_v21 = vmul.f32 %v2207_v43, %v1573_v2 }
 0x9ed   : > { %v1580_v54 = vmul.f32 %v2209_v52, %v1538_v46  ;;  %vm1586_vm9 = vweird.f32 %v2209_v52 }
 0x9ee   : > { %v1578_v55 = vsel %vm1577_vm8, %v2207_v43, %v1574_v21  ;;  %vm1587_vm11 = vmor %vm1585_vm10, %vm1586_vm9 }
 0x9ef   : > { %v1581_v5 = vmul.f32 %v2209_v52, %v1580_v54  ;;  %v1592_v47 = vmul.f32 %v1578_v55, %v2951_v62 }
 0x9f1   : > { %v1582_v56 = vmul.f32 0.5, %v1581_v5  ;;  %1994 = vmatmul.msk.f32.gmra.mxu1 %vm428_vm0, %v1592_v47 }
 0x9f3   : > { %v1583_v57 = vsub.f32 1.5, %v1582_v56 }
 0x9f5   : > { %v1584_v58 = vmul.f32 %v2209_v52, %v1583_v57 }
 0x9f7   : > { %v1588_v45 = vsel %vm1587_vm11, %v2209_v52, %v1584_v58 }
 0x9f8   : > { %v1593_v53 = vmul.f32 %v1588_v45, %v2958_v7 }
 0x9fa   : > { %1995 = vmatmul.msk.f32.gmra.mxu1 %vm428_vm0, %v1593_v53 }
 0xa09   : > { %v1632_v8 = vpop.f32.mrf.mxu1 }
 0xa0a   : > { %v1633_v59 = vadd.f32 %v2930_v1, %v1632_v8  ;;  %v1791_v8 = vld [vmem:[%s3052_s10 + $0x18] sm:$0xff] }
 0xa0b   : > { %1830 = vmatpush.msrb.mxu0 %v1791_v8 }
 0xa0c   : > { %v1645_v6 = vsub.f32 0.0, %v1633_v59 }
 0xa0e   : > { %v1651_v60 = vmul.f32 1.442695, %v1645_v6 }
 0xa10   : > { %2210 = vpow2.f32 %v1651_v60 }
 0xa16   : > { %v2211_v61 = vpop.eup %2210 }
 0xa17   : > { %v1660_v62 = vadd.f32 1.0, %v2211_v61 }
 0xa19   : > { %2212 = vrcp.f32 %v1660_v62  ;;  %v1690_v4 = vand.u32 2147483648, %v1660_v62  ;;  %v1688_v10 = vand.u32 2147483647, %v1660_v62  ;;  %vm1684_vm14 = vweird.f32 %v1660_v62 }
 0xa1b   : > { %v1691_v7 = vor.u32 1.1754944e-38, %v1690_v4  ;;  %vm1689_vm1 = vcmp.eq.f32.partialorder %v1688_v10, 8.507059e+37 }
 0xa1f   : > { %v2213_v63 = vpop.eup %2212 }
 0xa20   : > { %v1680_v3 = vmul.f32 %v2213_v63, %v1660_v62  ;;  %vm1685_vm12 = vweird.f32 %v2213_v63 }
 0xa21   : > { %vm1686_vm15 = vmor %vm1684_vm14, %vm1685_vm12 }
 0xa22   : > { %v1681_v30 = vsub.f32 1.0, %v1680_v3 }
 0xa24   : > { %v1682_v9 = vmul.f32 %v2213_v63, %v1681_v30 }
 0xa26   : > { %v1683_v11 = vadd.f32 %v2213_v63, %v1682_v9 }
 0xa28   : > { %v1687_v12 = vsel %vm1686_vm15, %v2213_v63, %v1683_v11  ;;  %v1790_v11 = vld [vmem:[%s3052_s10 + $0x10] sm:$0xff] }
 0xa29   : > { %v1692_v13 = vsel %vm1689_vm1, %v1691_v7, %v1687_v12  ;;  %1831 = vmatpush.msrb.mxu0 %v1790_v11  ;;  %v1789_v7 = vld [vmem:[%s3052_s10 + $0x8] sm:$0xff]  ;;  %v1788_v12 = vld [vmem:[%s3052_s10] sm:$0xff] }
 0xa2a   : > { %v1693_v15 = vmul.f32 %v1692_v13, %v1633_v59 }
 0xa2b   : > { %1832 = vmatpush.msrb.mxu0 %v1789_v7 }
 0xa2c   : > { %1997 = vmatmul.msk.f32.gmra.mxu3 %vm1739_vm13, %v1693_v15 }
 0xa2d   : > { %1833 = vmatpush.msrb.mxu0 %v1788_v12 }
 0xa55   : > { %v1795_v17 = vpop.xlane.xlu2 %1794 }
 0xa56   : > { %v1796_v18 = vmul.f32 %v1795_v17, %v2444_v16 }
 0xa58   : > { %v2983_v20 = vsub.f32 %v1787_v39, %v1796_v18 }
 0xa5a   : > { %v1798_v23 = vmul.f32 %v2983_v20, %v2983_v20 }
 0xa5c   : > { %v1799_v25 = vsel %vm1792_vm5, %v1798_v23, 0.0 }
 0xa5d   : > { %1800 = vadd.xlane.f32.xlu0 %v1799_v25 }
 0xa5f   : > { %v1635_v26 = vpop.f32.mrf.mxu1 }
 0xa60   : > { %v1636_v22 = vadd.f32 %v2930_v1, %v1635_v26 }
 0xa62   : > { %v1646_v27 = vsub.f32 0.0, %v1636_v22 }
 0xa64   : > { %v1653_v50 = vmul.f32 1.442695, %v1646_v27 }
 0xa66   : > { %2214 = vpow2.f32 %v1653_v50 }
 0xa6c   : > { %v2215_v24 = vpop.eup %2214 }
 0xa6d   : > { %v1661_v28 = vadd.f32 1.0, %v2215_v24 }
 0xa6e   : > { %v1638_v29 = vpop.f32.mrf.mxu1 }
 0xa6f   : > { %2216 = vrcp.f32 %v1661_v28  ;;  %v1639_v37 = vadd.f32 %v2930_v1, %v1638_v29  ;;  %v1705_v36 = vand.u32 2147483648, %v1661_v28  ;;  %v1703_v39 = vand.u32 2147483647, %v1661_v28 }
 0xa70   : > { %vm1699_vm3 = vweird.f32 %v1661_v28 }
 0xa71   : > { %v1647_v31 = vsub.f32 0.0, %v1639_v37  ;;  %v1706_v42 = vor.u32 1.1754944e-38, %v1705_v36  ;;  %vm1704_vm6 = vcmp.eq.f32.partialorder %v1703_v39, 8.507059e+37 }
 0xa73   : > { %v1655_v35 = vmul.f32 1.442695, %v1647_v31 }
 0xa75   : > { %v2217_v38 = vpop.eup %2216  ;;  %2218 = vpow2.f32 %v1655_v35 }
 0xa76   : > { %v1695_v14 = vmul.f32 %v2217_v38, %v1661_v28  ;;  %vm1700_vm2 = vweird.f32 %v2217_v38 }
 0xa77   : > { %v1641_v32 = vpop.f32.mrf.mxu1  ;;  %vm1701_vm4 = vmor %vm1699_vm3, %vm1700_vm2 }
 0xa78   : > { %v1696_v0 = vsub.f32 1.0, %v1695_v14  ;;  %v1642_v44 = vadd.f32 %v2930_v1, %v1641_v32 }
 0xa7a   : > { %v1697_v34 = vmul.f32 %v2217_v38, %v1696_v0  ;;  %v1648_v40 = vsub.f32 0.0, %v1642_v44 }
 0xa7b   : > { %v2219_v41 = vpop.eup %2218 }
 0xa7c   : > { %v1698_v49 = vadd.f32 %v2217_v38, %v1697_v34  ;;  %v1657_v48 = vmul.f32 1.442695, %v1648_v40  ;;  %v1662_v43 = vadd.f32 1.0, %v2219_v41 }
 0xa7e   : > { %v1702_v33 = vsel %vm1701_vm4, %v2217_v38, %v1698_v49  ;;  %2220 = vpow2.f32 %v1657_v48  ;;  %v1720_v54 = vand.u32 2147483648, %v1662_v43  ;;  %v1718_v5 = vand.u32 2147483647, %v1662_v43 }
 0xa7f   : > { %v1707_v46 = vsel %vm1704_vm6, %v1706_v42, %v1702_v33  ;;  %2222 = vrcp.f32 %v1662_v43  ;;  %vm1714_vm8 = vweird.f32 %v1662_v43 }
 0xa80   : > { %v1708_v51 = vmul.f32 %v1707_v46, %v1636_v22  ;;  %v1721_v57 = vor.u32 1.1754944e-38, %v1720_v54  ;;  %vm1719_vm10 = vcmp.eq.f32.partialorder %v1718_v5, 8.507059e+37 }
 0xa82   : > { %1998 = vmatmul.msk.f32.gmra.mxu3 %vm1739_vm13, %v1708_v51 }
 0xa84   : > { %v2221_v1 = vpop.eup %2220 }
 0xa85   : > { %v2223_v19 = vpop.eup %2222  ;;  %v1663_v2 = vadd.f32 1.0, %v2221_v1 }
 0xa86   : > { %v1710_v52 = vmul.f32 %v2223_v19, %v1662_v43  ;;  %vm1715_vm7 = vweird.f32 %v2223_v19 }
 0xa87   : > { %2224 = vrcp.f32 %v1663_v2  ;;  %vm1716_vm9 = vmor %vm1714_vm8, %vm1715_vm7  ;;  %v1735_v60 = vand.u32 2147483648, %v1663_v2  ;;  %v1733_v62 = vand.u32 2147483647, %v1663_v2  ;;  %vm1729_vm12 = vweird.f32 %v1663_v2 }
 0xa88   : > { %v1711_v21 = vsub.f32 1.0, %v1710_v52 }
 0xa89   : > { %v1736_v3 = vor.u32 1.1754944e-38, %v1735_v60  ;;  %vm1734_vm15 = vcmp.eq.f32.partialorder %v1733_v62, 8.507059e+37 }
 0xa8a   : > { %v1712_v55 = vmul.f32 %v2223_v19, %v1711_v21 }
 0xa8c   : > { %v1713_v47 = vadd.f32 %v2223_v19, %v1712_v55 }
 0xa8d   : > { %v2225_v56 = vpop.eup %2224 }
 0xa8e   : > { %v1717_v58 = vsel %vm1716_vm9, %v2223_v19, %v1713_v47  ;;  %v1725_v45 = vmul.f32 %v2225_v56, %v1663_v2  ;;  %vm1730_vm11 = vweird.f32 %v2225_v56 }
 0xa8f   : > { %v1722_v53 = vsel %vm1719_vm10, %v1721_v57, %v1717_v58  ;;  %vm1731_vm14 = vmor %vm1729_vm12, %vm1730_vm11 }
 0xa90   : > { %v1723_v59 = vmul.f32 %v1722_v53, %v1639_v37  ;;  %v1726_v6 = vsub.f32 1.0, %v1725_v45 }
 0xa92   : > { %v1727_v61 = vmul.f32 %v2225_v56, %v1726_v6  ;;  %1999 = vmatmul.msk.f32.gmra.mxu3 %vm1739_vm13, %v1723_v59 }
 0xa94   : > { %v1728_v63 = vadd.f32 %v2225_v56, %v1727_v61 }
 0xa96   : > { %v1732_v30 = vsel %vm1731_vm14, %v2225_v56, %v1728_v63 }
 0xa97   : > { %v1737_v4 = vsel %vm1734_vm15, %v1736_v3, %v1732_v30 }
 0xa98   : > { %v1738_v9 = vmul.f32 %v1737_v4, %v1642_v44 }
 0xa9a   : > { %2000 = vmatmul.msk.f32.gmra.mxu3 %vm1739_vm13, %v1738_v9 }
 0xaaf   : > { %v1775_v10 = vpop.f32.mrf.mxu3 }
 0xad0   : > { %v1801_v13 = vpop.xlane.xlu0 %1800 }
 0xad1   : > { %v1802_v15 = vmul.f32 %v1801_v13, %v2444_v16 }
 0xad3   : > { %v1803_v17 = vadd.f32 1e-05, %v1802_v15 }
 0xad5   : > { %2226 = vrsqrt.f32 %v1803_v17  ;;  %vm1810_vm1 = vweird.f32 %v1803_v17 }
 0xadb   : > { %v2227_v18 = vpop.eup %2226 }
 0xadc   : > { %v1805_v23 = vmul.f32 %v2227_v18, %v1803_v17  ;;  %vm1811_vm13 = vweird.f32 %v2227_v18 }
 0xadd   : > { %vm1812_vm2 = vmor %vm1810_vm1, %vm1811_vm13 }
 0xade   : > { %v1806_v25 = vmul.f32 %v2227_v18, %v1805_v23 }
 0xae0   : > { %v1807_v26 = vmul.f32 0.5, %v1806_v25 }
 0xae2   : > { %v1808_v22 = vsub.f32 1.5, %v1807_v26 }
 0xae4   : > { %v1809_v27 = vmul.f32 %v2227_v18, %v1808_v22 }
 0xae6   : > { %v1813_v50 = vsel %vm1812_vm2, %v2227_v18, %v1809_v27 }
 0xae7   : > { %v1814_v24 = vmul.f32 %v1813_v50, %v2983_v20 }
 0xae9   : > { %2001 = vmatmul.msk.f32.vlgmr.msrb.gmra.mxu0 %vm428_vm0, %v1814_v24 }
 0xb05   : > { %v1777_v28 = vpop.f32.mrf.mxu3 }
 0xb15   : > { %v1779_v16 = vpop.f32.mrf.mxu3 }
 0xb1d   : > { %v1781_v29 = vpop.f32.mrf.mxu3 }
 0xb66   : > { %v1835_v37 = vpop.f32.mrf.mxu0 }
 0xb67   : > { %1838 = vst.msk [vmem:[%s389_s22] sm:$0x1] %vm1792_vm5, %v1835_v37 }
 0xb68   : > { %2260 = shalt.err (!%p2257_p3)
}
 0xb69   : > { %2005 = dma.vmem_to_hbm [thread:$0]  (%p2410_p5), %s1851_s30, 16, %s1853_s12, %s1840_s13  }
 0xb6a PF: > { %p2011_p4 = scmp.ge.s32.totalorder %s2295_s20, 2  ;;  %s1864_s29 = sand.u32 1, %s2283_s17  }
 0xb6b   : > { %s1865_s0 = scalar_lea.sflag [#allocation3], %s1864_s29 }
 0xb6c   : > { %p2008_p7 = pnand %p2011_p4, %p2414_p6 }
 0xb6e   : > { %p2009_p8 = pneg %p2008_p7 }
 0xb70   : > { %2278 = dma.done.wait (%p2009_p8), %s1865_s0, 16  }
 0xb71   : > { %2280 = vsyncadd (%p2009_p8), %s1865_s0, 4294967280  ;;  %p21_p9 = scmp.ge.s32.totalorder %s2397_s23, 4   ;;  %s3067_s17 = smov %s2287_s18 }
 0xb72   : > { %s3068_s18 = smov %s2291_s19  ;;  %s3069_s19 = smov %s2408_s26 }
 0xb73   : > { %s3070_s20 = smov %s2397_s23  ;;  %23 = sbr.rel (!%p21_p9) target bundleno = 6 (0x6), region = 102 }
 0xb78   :  { %1870 = vsyncpa [#allocation3], 1 }
 0xb79   :  { %1872 = vsyncpa [#allocation3 + $0x1], 1 }

</bundles_post_ra>
